<compile_context>
chip_gen: v7x
topology: tpu7x:2x2x1
jax: 0.10.0
libtpu: 0.0.40
codegen_flags: <defaults>
</compile_context>

<pallas_src>
import functools

import jax
import jax.numpy as jnp
from jax.experimental import pallas as pl
from jax.experimental.pallas import tpu as pltpu


def _round_up(x, m):
    return ((x + m - 1) // m) * m


def _place_gate_cols(w, H, Hp):
    """Re-lay fused gate columns [.., 4H] -> [.., 4Hp]; gate k at cols [k*Hp, k*Hp+H)."""
    rows = w.shape[0]
    out = jnp.zeros((rows, 4 * Hp), w.dtype)
    for k in range(4):
        out = out.at[:, k * Hp:k * Hp + H].set(w[:, k * H:(k + 1) * H])
    return out


def _lstm_block_kernel(zx_ref, wh_ref, h0_ref, c0_ref,
                       h_seq_ref, h_last_ref, c_last_ref,
                       h_sc, c_sc, *, seq_len, steps_per_block):
    """One grid step == `steps_per_block` LSTM timesteps.

    zx_ref     : [Tt, Bp, 4Hp]  precomputed x@W_x + b for this time block (streamed)
    wh_ref     : [Hp, 4Hp]      fused hidden->gate weights, bf16, VMEM-resident
    h0_ref     : [Bp, Hp]       initial hidden state
    c0_ref     : [Bp, Hp]       initial cell state
    h_seq_ref  : [Tt, Bp, Hp]   per-step hidden outputs for this time block
    h_last_ref : [Bp, Hp]       final hidden state (written on last grid step)
    c_last_ref : [Bp, Hp]       final cell state   (written on last grid step)
    h_sc, c_sc : VMEM scratch [Bp, Hp] f32 — recurrent carry across grid steps
    """
    tb = pl.program_id(0)
    Hp = h_sc.shape[-1]

    # Seed the recurrent carry once.
    @pl.when(tb == 0)
    def _():
        h_sc[...] = h0_ref[...].astype(jnp.float32)
        c_sc[...] = c0_ref[...].astype(jnp.float32)

    wh = wh_ref[...]                                   # bf16 [Hp, 4Hp], read once per block
    t_base = tb * steps_per_block
    needs_mask = (seq_len % steps_per_block) != 0      # static Python bool

    def step(i, carry):
        h, c = carry
        # Single per-step MXU dot (bf16 x bf16 -> f32); x-projection + bias already folded in.
        z = zx_ref[i] + jnp.dot(h.astype(wh.dtype), wh,
                                preferred_element_type=jnp.float32)
        # Gate order: i | f | o | g, lane-aligned blocks of width Hp.
        i_t = jax.nn.sigmoid(z[:, 0 * Hp:1 * Hp])
        f_t = jax.nn.sigmoid(z[:, 1 * Hp:2 * Hp])
        o_t = jax.nn.sigmoid(z[:, 2 * Hp:3 * Hp])
        g_t = jnp.tanh(z[:, 3 * Hp:4 * Hp])
        c_new = f_t * c + i_t * g_t
        h_new = o_t * jnp.tanh(c_new)
        if needs_mask:
            # Freeze the carry on padded tail steps (t >= seq_len).
            keep = ((t_base + i) < seq_len).astype(jnp.float32)
            h_new = keep * h_new + (1.0 - keep) * h
            c_new = keep * c_new + (1.0 - keep) * c
        # TODO(synk): nn.Dropout(0.2) is identity in eval mode; train-mode dropout
        # would use pltpu.prng_seed / pltpu.stateful_bernoulli on h_new here.
        h_seq_ref[i] = h_new.astype(h_seq_ref.dtype)
        return h_new, c_new

    h_f, c_f = jax.lax.fori_loop(0, steps_per_block, step,
                                 (h_sc[...], c_sc[...]), unroll=True)
    h_sc[...] = h_f
    c_sc[...] = c_f

    # Final states leave VMEM exactly once.
    @pl.when(tb == pl.num_programs(0) - 1)
    def _():
        h_last_ref[...] = h_f.astype(h_last_ref.dtype)
        c_last_ref[...] = c_f.astype(c_last_ref.dtype)


def lstm_scan(x_seq, h0, c0, w_x, w_h, b, *, time_block=8):
    """Run the LSTM cell over x_seq: [T, B, I]. Returns (h_seq [T,B,H], h_T, c_T)."""
    T, B, I = x_seq.shape
    H = h0.shape[-1]
    dt = x_seq.dtype

    SUB, LANE = 8, 128
    B_pad = _round_up(B, SUB)            # full f32 sublanes
    Hp = _round_up(H, LANE)              # lane-aligned gates / stores
    Tt = max(1, min(time_block, T))      # timesteps per grid block
    T_pad = _round_up(T, Tt)
    n_blocks = T_pad // Tt

    # Lane-aligned fused gate layout (gate k at columns [k*Hp, k*Hp + H)).
    wx_p = _place_gate_cols(w_x, H, Hp).astype(jnp.float32)              # [I, 4Hp]
    b_p = _place_gate_cols(b[None, :], H, Hp)[0].astype(jnp.float32)     # [4Hp]
    wh_p = jnp.zeros((Hp, 4 * Hp), jnp.float32).at[:H].set(
        _place_gate_cols(w_h, H, Hp).astype(jnp.float32))                # [Hp, 4Hp]
    wh_bf16 = wh_p.astype(jnp.bfloat16)                                  # MXU operand only

    # Hoisted input projection: one large batched matmul over all T*B rows
    # (no serial dependence), bias folded in. Only Z_x streams into the kernel.
    x_p = jnp.pad(x_seq.astype(jnp.float32),
                  ((0, T_pad - T), (0, B_pad - B), (0, 0)))
    zx = jnp.einsum('tbi,ij->tbj', x_p, wx_p,
                    preferred_element_type=jnp.float32) + b_p            # [T_pad, B_pad, 4Hp]

    # Padded hidden/cell lanes start at 0 and stay exactly 0 through the recurrence.
    h0_p = jnp.zeros((B_pad, Hp), jnp.float32).at[:B, :H].set(h0.astype(jnp.float32))
    c0_p = jnp.zeros((B_pad, Hp), jnp.float32).at[:B, :H].set(c0.astype(jnp.float32))

    kernel = functools.partial(_lstm_block_kernel, seq_len=T, steps_per_block=Tt)

    # Explicit VMEM budget: resident W_h + double-buffered streamed blocks + states.
    f32b, bf16b = 4, 2
    vmem_need = (2 * Hp * 4 * Hp * bf16b              # W_h
                 + 2 * Tt * B_pad * 4 * Hp * f32b     # Z_x block
                 + 2 * Tt * B_pad * Hp * f32b         # h_seq block
                 + 8 * B_pad * Hp * f32b              # h0/c0 in, h_T/c_T out
                 + 2 * B_pad * Hp * f32b)             # h/c scratch
    vmem_limit = int(min(max(2 * vmem_need, 16 << 20), 48 << 20))

    h_seq, h_last, c_last = pl.pallas_call(
        kernel,
        out_shape=(
            jax.ShapeDtypeStruct((T_pad, B_pad, Hp), dt),
            jax.ShapeDtypeStruct((B_pad, Hp), dt),
            jax.ShapeDtypeStruct((B_pad, Hp), dt),
        ),
        grid=(n_blocks,),
        in_specs=[
            pl.BlockSpec((Tt, B_pad, 4 * Hp), lambda tb: (tb, 0, 0)),   # Z_x, streamed
            pl.BlockSpec((Hp, 4 * Hp), lambda tb: (0, 0)),              # W_h, resident
            pl.BlockSpec((B_pad, Hp), lambda tb: (0, 0)),               # h0
            pl.BlockSpec((B_pad, Hp), lambda tb: (0, 0)),               # c0
        ],
        out_specs=(
            pl.BlockSpec((Tt, B_pad, Hp), lambda tb: (tb, 0, 0)),       # h per step
            pl.BlockSpec((B_pad, Hp), lambda tb: (0, 0)),               # h_T
            pl.BlockSpec((B_pad, Hp), lambda tb: (0, 0)),               # c_T
        ),
        scratch_shapes=[
            pltpu.VMEM((B_pad, Hp), jnp.float32),                       # h carry
            pltpu.VMEM((B_pad, Hp), jnp.float32),                       # c carry
        ],
        compiler_params=pltpu.CompilerParams(
            dimension_semantics=("arbitrary",),                         # sequential recurrence
            vmem_limit_bytes=vmem_limit,
        ),
    )(zx, wh_bf16, h0_p, c0_p)

    return h_seq[:T, :B, :H], h_last[:B, :H], c_last[:B, :H]


lstm_scan_jit = jax.jit(lstm_scan, static_argnames=("time_block",))


def lstm_from_scratch_step(x_t, states, params):
    """Exact forward of the PyTorch module: returns (h_t, (h_t, c_t))."""
    h_prev, c_prev = states
    w_x, w_h, b = params
    h_seq, h_t, c_t = lstm_scan_jit(x_t[None], h_prev, c_prev, w_x, w_h, b)
    return h_t, (h_t, c_t)


def init_params(key, input_size, hidden_size, dtype=jnp.float32):
    """nn.Linear-style init (uniform +-1/sqrt(fan_in)), fused gate order i|f|o|g.

    Returns (W_x [I,4H], W_h [H,4H], b [4H]) — the split of cat(x,h) @ W_fused.
    """
    D = input_size + hidden_size
    bound = 1.0 / (D ** 0.5)
    kx, kh, kb = jax.random.split(key, 3)
    w_x = jax.random.uniform(kx, (input_size, 4 * hidden_size), dtype,
                             minval=-bound, maxval=bound)
    w_h = jax.random.uniform(kh, (hidden_size, 4 * hidden_size), dtype,
                             minval=-bound, maxval=bound)
    b = jax.random.uniform(kb, (4 * hidden_size,), dtype,
                           minval=-bound, maxval=bound)
    return w_x, w_h, b


def reference_scan(x_seq, h0, c0, w_x, w_h, b):
    """Pure-JAX reference: the PyTorch forward applied step-by-step (eval mode)."""
    H = h0.shape[-1]

    def cell(carry, x_t):
        h, c = carry
        z = x_t @ w_x + h @ w_h + b
        i_t = jax.nn.sigmoid(z[:, 0 * H:1 * H])
        f_t = jax.nn.sigmoid(z[:, 1 * H:2 * H])
        o_t = jax.nn.sigmoid(z[:, 2 * H:3 * H])
        g_t = jnp.tanh(z[:, 3 * H:4 * H])
        c_new = f_t * c + i_t * g_t
        h_new = o_t * jnp.tanh(c_new)
        return (h_new, c_new), h_new

    (h_last, c_last), hs = jax.lax.scan(cell, (h0, c0), x_seq)
    return hs, h_last, c_last


if __name__ == "__main__":
    input_size = 16
    hidden_size = 32
    batch = 2
    seq_len = 8

    key = jax.random.PRNGKey(0)
    k_x, k_h, k_c, k_p = jax.random.split(key, 4)

    x_seq = jax.random.normal(k_x, (seq_len, batch, input_size), jnp.float32)
    h0 = jax.random.normal(k_h, (batch, hidden_size), jnp.float32)
    c0 = jax.random.normal(k_c, (batch, hidden_size), jnp.float32)
    params = init_params(k_p, input_size, hidden_size)
    w_x, w_h, b = params

    h_seq_ref, h_last_ref, c_last_ref = reference_scan(x_seq, h0, c0, w_x, w_h, b)

    # Full-sequence run (whole sequence inside one time block).
    h_seq, h_last, c_last = lstm_scan_jit(x_seq, h0, c0, w_x, w_h, b)
    jax.block_until_ready((h_seq, h_last, c_last))
    assert h_seq.shape == (seq_len, batch, hidden_size)
    # bf16 W_h in the recurrent matmul -> relaxed tolerance vs the f32 reference.
    assert jnp.allclose(h_seq, h_seq_ref, atol=2e-2, rtol=2e-2)
    assert jnp.allclose(h_last, h_last_ref, atol=2e-2, rtol=2e-2)
    assert jnp.allclose(c_last, c_last_ref, atol=2e-2, rtol=2e-2)

    # Multi-block + ragged-tail path (T=8 with time_block=3 -> grid=(3,), padded tail).
    h_seq3, h_last3, c_last3 = lstm_scan_jit(x_seq, h0, c0, w_x, w_h, b, time_block=3)
    jax.block_until_ready((h_seq3, h_last3, c_last3))
    assert jnp.allclose(h_seq3, h_seq_ref, atol=2e-2, rtol=2e-2)
    assert jnp.allclose(h_last3, h_last_ref, atol=2e-2, rtol=2e-2)
    assert jnp.allclose(c_last3, c_last_ref, atol=2e-2, rtol=2e-2)

    # Single-step call matching the PyTorch module signature exactly.
    h_t, (h_state, c_state) = lstm_from_scratch_step(x_seq[0], (h0, c0), params)
    jax.block_until_ready((h_t, h_state, c_state))
    assert h_t.shape == (batch, hidden_size)
    assert c_state.shape == (batch, hidden_size)
    assert jnp.allclose(h_t, h_seq_ref[0], atol=2e-2, rtol=2e-2)

    print("KERNEL_OK")
</pallas_src>

<mosaic_0001>
module attributes {stable_mosaic.version = 11 : i64} {
  func.func @_lstm_block_kernel(%arg0: i32, %arg1: memref<8x8x512xf32, #tpu.memory_space<vmem>>, %arg2: memref<128x512xbf16, #tpu.memory_space<vmem>>, %arg3: memref<8x128xf32, #tpu.memory_space<vmem>>, %arg4: memref<8x128xf32, #tpu.memory_space<vmem>>, %arg5: memref<8x8x128xf32, #tpu.memory_space<vmem>>, %arg6: memref<8x128xf32, #tpu.memory_space<vmem>>, %arg7: memref<8x128xf32, #tpu.memory_space<vmem>>, %arg8: memref<8x128xf32, #tpu.memory_space<vmem>>, %arg9: memref<8x128xf32, #tpu.memory_space<vmem>>) attributes {dimension_semantics = [#tpu.dimension_semantics<arbitrary>], iteration_bounds = array<i64: 1>, scalar_prefetch = 0 : i64, scratch_operands = 2 : i64, tpu.core_type = #tpu.core_type<tc>, window_params = [{transform_indices = @transform_0, window_bounds = array<i64: 8, 8, 512>}, {pipeline_mode = #tpu.pipeline_mode<synchronous>, transform_indices = @transform_1, window_bounds = array<i64: 128, 512>}, {pipeline_mode = #tpu.pipeline_mode<synchronous>, transform_indices = @transform_2, window_bounds = array<i64: 8, 128>}, {pipeline_mode = #tpu.pipeline_mode<synchronous>, transform_indices = @transform_3, window_bounds = array<i64: 8, 128>}, {transform_indices = @transform_4, window_bounds = array<i64: 8, 8, 128>}, {pipeline_mode = #tpu.pipeline_mode<synchronous>, transform_indices = @transform_5, window_bounds = array<i64: 8, 128>}, {pipeline_mode = #tpu.pipeline_mode<synchronous>, transform_indices = @transform_6, window_bounds = array<i64: 8, 128>}]} {
    %c0_i32 = arith.constant 0 : i32
    %0 = arith.cmpi eq, %arg0, %c0_i32 : i32
    %1 = arith.extui %0 : i1 to i32
    %c0_i32_0 = arith.constant 0 : i32
    %2 = arith.cmpi ne, %1, %c0_i32_0 : i32
    scf.if %2 {
      %c0_76 = arith.constant 0 : index
      %c0_77 = arith.constant 0 : index
      %291 = vector.load %arg3[%c0_76, %c0_77] : memref<8x128xf32, #tpu.memory_space<vmem>>, vector<8x128xf32>
      %c0_78 = arith.constant 0 : index
      %c0_79 = arith.constant 0 : index
      %292 = vector.load %arg8[%c0_78, %c0_79] : memref<8x128xf32, #tpu.memory_space<vmem>>, vector<8x128xf32>
      tpu.vector_store %arg8[%c0_78, %c0_79], %291 {strides = array<i32>} : memref<8x128xf32, #tpu.memory_space<vmem>>, vector<8x128xf32>,
      %c0_80 = arith.constant 0 : index
      %c0_81 = arith.constant 0 : index
      %293 = vector.load %arg4[%c0_80, %c0_81] : memref<8x128xf32, #tpu.memory_space<vmem>>, vector<8x128xf32>
      %c0_82 = arith.constant 0 : index
      %c0_83 = arith.constant 0 : index
      %294 = vector.load %arg9[%c0_82, %c0_83] : memref<8x128xf32, #tpu.memory_space<vmem>>, vector<8x128xf32>
      tpu.vector_store %arg9[%c0_82, %c0_83], %293 {strides = array<i32>} : memref<8x128xf32, #tpu.memory_space<vmem>>, vector<8x128xf32>,
    } else {
    }
    %c0 = arith.constant 0 : index
    %c0_1 = arith.constant 0 : index
    %3 = vector.load %arg2[%c0, %c0_1] : memref<128x512xbf16, #tpu.memory_space<vmem>>, vector<128x512xbf16>
    %c0_2 = arith.constant 0 : index
    %c0_3 = arith.constant 0 : index
    %4 = vector.load %arg8[%c0_2, %c0_3] : memref<8x128xf32, #tpu.memory_space<vmem>>, vector<8x128xf32>
    %c0_4 = arith.constant 0 : index
    %c0_5 = arith.constant 0 : index
    %5 = vector.load %arg9[%c0_4, %c0_5] : memref<8x128xf32, #tpu.memory_space<vmem>>, vector<8x128xf32>
    %c0_i32_6 = arith.constant 0 : i32
    %6 = arith.index_cast %c0_i32_6 : i32 to index
    %c0_7 = arith.constant 0 : index
    %c0_8 = arith.constant 0 : index
    %7 = vector.load %arg1[%6, %c0_7, %c0_8] : memref<8x8x512xf32, #tpu.memory_space<vmem>>, vector<1x8x512xf32>
    %8 = vector.shape_cast %7 : vector<1x8x512xf32> to vector<8x512xf32>
    %9 = arith.truncf %4 : vector<8x128xf32> to vector<8x128xbf16>
    %cst = arith.constant dense<0.000000e+00> : vector<8x512xf32>
    %10 = tpu.matmul %9, %3, %cst {dimension_numbers = #tpu.dot_dimension_numbers<[1], [0], [0], [1], [0, 0, 1, 1], [], []>} : vector<8x128xbf16>, vector<128x512xbf16>, vector<8x512xf32> -> vector<8x512xf32>
    %11 = arith.addf %8, %10 : vector<8x512xf32>
    %12 = vector.extract_strided_slice %11 {offsets = [0, 0], sizes = [8, 128], strides = [1, 1]} : vector<8x512xf32> to vector<8x128xf32>
    %13 = arith.negf %12 : vector<8x128xf32>
    %14 = math.exp %13 : vector<8x128xf32>
    %cst_9 = arith.constant 1.000000e+00 : f32
    %15 = vector.broadcast %cst_9 : f32 to vector<8x128xf32>
    %16 = arith.addf %15, %14 : vector<8x128xf32>
    %17 = arith.divf %15, %16 : vector<8x128xf32>
    %18 = vector.extract_strided_slice %11 {offsets = [0, 128], sizes = [8, 128], strides = [1, 1]} : vector<8x512xf32> to vector<8x128xf32>
    %19 = arith.negf %18 : vector<8x128xf32>
    %20 = math.exp %19 : vector<8x128xf32>
    %cst_10 = arith.constant 1.000000e+00 : f32
    %21 = vector.broadcast %cst_10 : f32 to vector<8x128xf32>
    %22 = arith.addf %21, %20 : vector<8x128xf32>
    %23 = arith.divf %21, %22 : vector<8x128xf32>
    %24 = vector.extract_strided_slice %11 {offsets = [0, 256], sizes = [8, 128], strides = [1, 1]} : vector<8x512xf32> to vector<8x128xf32>
    %25 = arith.negf %24 : vector<8x128xf32>
    %26 = math.exp %25 : vector<8x128xf32>
    %cst_11 = arith.constant 1.000000e+00 : f32
    %27 = vector.broadcast %cst_11 : f32 to vector<8x128xf32>
    %28 = arith.addf %27, %26 : vector<8x128xf32>
    %29 = arith.divf %27, %28 : vector<8x128xf32>
    %30 = vector.extract_strided_slice %11 {offsets = [0, 384], sizes = [8, 128], strides = [1, 1]} : vector<8x512xf32> to vector<8x128xf32>
    %31 = math.tanh %30 : vector<8x128xf32>
    %32 = arith.mulf %23, %5 : vector<8x128xf32>
    %33 = arith.mulf %17, %31 : vector<8x128xf32>
    %34 = arith.addf %32, %33 : vector<8x128xf32>
    %35 = math.tanh %34 : vector<8x128xf32>
    %36 = arith.mulf %29, %35 : vector<8x128xf32>
    %37 = arith.index_cast %c0_i32_6 : i32 to index
    %c0_12 = arith.constant 0 : index
    %c0_13 = arith.constant 0 : index
    %38 = vector.load %arg5[%37, %c0_12, %c0_13] : memref<8x8x128xf32, #tpu.memory_space<vmem>>, vector<1x8x128xf32>
    %39 = vector.shape_cast %38 : vector<1x8x128xf32> to vector<8x128xf32>
    %40 = vector.shape_cast %36 : vector<8x128xf32> to vector<1x8x128xf32>
    tpu.vector_store %arg5[%37, %c0_12, %c0_13], %40 {strides = array<i32>} : memref<8x8x128xf32, #tpu.memory_space<vmem>>, vector<1x8x128xf32>,
    %c1_i32 = arith.constant 1 : i32
    %41 = arith.index_cast %c1_i32 : i32 to index
    %c0_14 = arith.constant 0 : index
    %c0_15 = arith.constant 0 : index
    %42 = vector.load %arg1[%41, %c0_14, %c0_15] : memref<8x8x512xf32, #tpu.memory_space<vmem>>, vector<1x8x512xf32>
    %43 = vector.shape_cast %42 : vector<1x8x512xf32> to vector<8x512xf32>
    %44 = arith.truncf %36 : vector<8x128xf32> to vector<8x128xbf16>
    %cst_16 = arith.constant dense<0.000000e+00> : vector<8x512xf32>
    %45 = tpu.matmul %44, %3, %cst_16 {dimension_numbers = #tpu.dot_dimension_numbers<[1], [0], [0], [1], [0, 0, 1, 1], [], []>} : vector<8x128xbf16>, vector<128x512xbf16>, vector<8x512xf32> -> vector<8x512xf32>
    %46 = arith.addf %43, %45 : vector<8x512xf32>
    %47 = vector.extract_strided_slice %46 {offsets = [0, 0], sizes = [8, 128], strides = [1, 1]} : vector<8x512xf32> to vector<8x128xf32>
    %48 = arith.negf %47 : vector<8x128xf32>
    %49 = math.exp %48 : vector<8x128xf32>
    %cst_17 = arith.constant 1.000000e+00 : f32
    %50 = vector.broadcast %cst_17 : f32 to vector<8x128xf32>
    %51 = arith.addf %50, %49 : vector<8x128xf32>
    %52 = arith.divf %50, %51 : vector<8x128xf32>
    %53 = vector.extract_strided_slice %46 {offsets = [0, 128], sizes = [8, 128], strides = [1, 1]} : vector<8x512xf32> to vector<8x128xf32>
    %54 = arith.negf %53 : vector<8x128xf32>
    %55 = math.exp %54 : vector<8x128xf32>
    %cst_18 = arith.constant 1.000000e+00 : f32
    %56 = vector.broadcast %cst_18 : f32 to vector<8x128xf32>
    %57 = arith.addf %56, %55 : vector<8x128xf32>
    %58 = arith.divf %56, %57 : vector<8x128xf32>
    %59 = vector.extract_strided_slice %46 {offsets = [0, 256], sizes = [8, 128], strides = [1, 1]} : vector<8x512xf32> to vector<8x128xf32>
    %60 = arith.negf %59 : vector<8x128xf32>
    %61 = math.exp %60 : vector<8x128xf32>
    %cst_19 = arith.constant 1.000000e+00 : f32
    %62 = vector.broadcast %cst_19 : f32 to vector<8x128xf32>
    %63 = arith.addf %62, %61 : vector<8x128xf32>
    %64 = arith.divf %62, %63 : vector<8x128xf32>
    %65 = vector.extract_strided_slice %46 {offsets = [0, 384], sizes = [8, 128], strides = [1, 1]} : vector<8x512xf32> to vector<8x128xf32>
    %66 = math.tanh %65 : vector<8x128xf32>
    %67 = arith.mulf %58, %34 : vector<8x128xf32>
    %68 = arith.mulf %52, %66 : vector<8x128xf32>
    %69 = arith.addf %67, %68 : vector<8x128xf32>
    %70 = math.tanh %69 : vector<8x128xf32>
    %71 = arith.mulf %64, %70 : vector<8x128xf32>
    %72 = arith.index_cast %c1_i32 : i32 to index
    %c0_20 = arith.constant 0 : index
    %c0_21 = arith.constant 0 : index
    %73 = vector.load %arg5[%72, %c0_20, %c0_21] : memref<8x8x128xf32, #tpu.memory_space<vmem>>, vector<1x8x128xf32>
    %74 = vector.shape_cast %73 : vector<1x8x128xf32> to vector<8x128xf32>
    %75 = vector.shape_cast %71 : vector<8x128xf32> to vector<1x8x128xf32>
    tpu.vector_store %arg5[%72, %c0_20, %c0_21], %75 {strides = array<i32>} : memref<8x8x128xf32, #tpu.memory_space<vmem>>, vector<1x8x128xf32>,
    %c2_i32 = arith.constant 2 : i32
    %76 = arith.index_cast %c2_i32 : i32 to index
    %c0_22 = arith.constant 0 : index
    %c0_23 = arith.constant 0 : index
    %77 = vector.load %arg1[%76, %c0_22, %c0_23] : memref<8x8x512xf32, #tpu.memory_space<vmem>>, vector<1x8x512xf32>
    %78 = vector.shape_cast %77 : vector<1x8x512xf32> to vector<8x512xf32>
    %79 = arith.truncf %71 : vector<8x128xf32> to vector<8x128xbf16>
    %cst_24 = arith.constant dense<0.000000e+00> : vector<8x512xf32>
    %80 = tpu.matmul %79, %3, %cst_24 {dimension_numbers = #tpu.dot_dimension_numbers<[1], [0], [0], [1], [0, 0, 1, 1], [], []>} : vector<8x128xbf16>, vector<128x512xbf16>, vector<8x512xf32> -> vector<8x512xf32>
    %81 = arith.addf %78, %80 : vector<8x512xf32>
    %82 = vector.extract_strided_slice %81 {offsets = [0, 0], sizes = [8, 128], strides = [1, 1]} : vector<8x512xf32> to vector<8x128xf32>
    %83 = arith.negf %82 : vector<8x128xf32>
    %84 = math.exp %83 : vector<8x128xf32>
    %cst_25 = arith.constant 1.000000e+00 : f32
    %85 = vector.broadcast %cst_25 : f32 to vector<8x128xf32>
    %86 = arith.addf %85, %84 : vector<8x128xf32>
    %87 = arith.divf %85, %86 : vector<8x128xf32>
    %88 = vector.extract_strided_slice %81 {offsets = [0, 128], sizes = [8, 128], strides = [1, 1]} : vector<8x512xf32> to vector<8x128xf32>
    %89 = arith.negf %88 : vector<8x128xf32>
    %90 = math.exp %89 : vector<8x128xf32>
    %cst_26 = arith.constant 1.000000e+00 : f32
    %91 = vector.broadcast %cst_26 : f32 to vector<8x128xf32>
    %92 = arith.addf %91, %90 : vector<8x128xf32>
    %93 = arith.divf %91, %92 : vector<8x128xf32>
    %94 = vector.extract_strided_slice %81 {offsets = [0, 256], sizes = [8, 128], strides = [1, 1]} : vector<8x512xf32> to vector<8x128xf32>
    %95 = arith.negf %94 : vector<8x128xf32>
    %96 = math.exp %95 : vector<8x128xf32>
    %cst_27 = arith.constant 1.000000e+00 : f32
    %97 = vector.broadcast %cst_27 : f32 to vector<8x128xf32>
    %98 = arith.addf %97, %96 : vector<8x128xf32>
    %99 = arith.divf %97, %98 : vector<8x128xf32>
    %100 = vector.extract_strided_slice %81 {offsets = [0, 384], sizes = [8, 128], strides = [1, 1]} : vector<8x512xf32> to vector<8x128xf32>
    %101 = math.tanh %100 : vector<8x128xf32>
    %102 = arith.mulf %93, %69 : vector<8x128xf32>
    %103 = arith.mulf %87, %101 : vector<8x128xf32>
    %104 = arith.addf %102, %103 : vector<8x128xf32>
    %105 = math.tanh %104 : vector<8x128xf32>
    %106 = arith.mulf %99, %105 : vector<8x128xf32>
    %107 = arith.index_cast %c2_i32 : i32 to index
    %c0_28 = arith.constant 0 : index
    %c0_29 = arith.constant 0 : index
    %108 = vector.load %arg5[%107, %c0_28, %c0_29] : memref<8x8x128xf32, #tpu.memory_space<vmem>>, vector<1x8x128xf32>
    %109 = vector.shape_cast %108 : vector<1x8x128xf32> to vector<8x128xf32>
    %110 = vector.shape_cast %106 : vector<8x128xf32> to vector<1x8x128xf32>
    tpu.vector_store %arg5[%107, %c0_28, %c0_29], %110 {strides = array<i32>} : memref<8x8x128xf32, #tpu.memory_space<vmem>>, vector<1x8x128xf32>,
    %c3_i32 = arith.constant 3 : i32
    %111 = arith.index_cast %c3_i32 : i32 to index
    %c0_30 = arith.constant 0 : index
    %c0_31 = arith.constant 0 : index
    %112 = vector.load %arg1[%111, %c0_30, %c0_31] : memref<8x8x512xf32, #tpu.memory_space<vmem>>, vector<1x8x512xf32>
    %113 = vector.shape_cast %112 : vector<1x8x512xf32> to vector<8x512xf32>
    %114 = arith.truncf %106 : vector<8x128xf32> to vector<8x128xbf16>
    %cst_32 = arith.constant dense<0.000000e+00> : vector<8x512xf32>
    %115 = tpu.matmul %114, %3, %cst_32 {dimension_numbers = #tpu.dot_dimension_numbers<[1], [0], [0], [1], [0, 0, 1, 1], [], []>} : vector<8x128xbf16>, vector<128x512xbf16>, vector<8x512xf32> -> vector<8x512xf32>
    %116 = arith.addf %113, %115 : vector<8x512xf32>
    %117 = vector.extract_strided_slice %116 {offsets = [0, 0], sizes = [8, 128], strides = [1, 1]} : vector<8x512xf32> to vector<8x128xf32>
    %118 = arith.negf %117 : vector<8x128xf32>
    %119 = math.exp %118 : vector<8x128xf32>
    %cst_33 = arith.constant 1.000000e+00 : f32
    %120 = vector.broadcast %cst_33 : f32 to vector<8x128xf32>
    %121 = arith.addf %120, %119 : vector<8x128xf32>
    %122 = arith.divf %120, %121 : vector<8x128xf32>
    %123 = vector.extract_strided_slice %116 {offsets = [0, 128], sizes = [8, 128], strides = [1, 1]} : vector<8x512xf32> to vector<8x128xf32>
    %124 = arith.negf %123 : vector<8x128xf32>
    %125 = math.exp %124 : vector<8x128xf32>
    %cst_34 = arith.constant 1.000000e+00 : f32
    %126 = vector.broadcast %cst_34 : f32 to vector<8x128xf32>
    %127 = arith.addf %126, %125 : vector<8x128xf32>
    %128 = arith.divf %126, %127 : vector<8x128xf32>
    %129 = vector.extract_strided_slice %116 {offsets = [0, 256], sizes = [8, 128], strides = [1, 1]} : vector<8x512xf32> to vector<8x128xf32>
    %130 = arith.negf %129 : vector<8x128xf32>
    %131 = math.exp %130 : vector<8x128xf32>
    %cst_35 = arith.constant 1.000000e+00 : f32
    %132 = vector.broadcast %cst_35 : f32 to vector<8x128xf32>
    %133 = arith.addf %132, %131 : vector<8x128xf32>
    %134 = arith.divf %132, %133 : vector<8x128xf32>
    %135 = vector.extract_strided_slice %116 {offsets = [0, 384], sizes = [8, 128], strides = [1, 1]} : vector<8x512xf32> to vector<8x128xf32>
    %136 = math.tanh %135 : vector<8x128xf32>
    %137 = arith.mulf %128, %104 : vector<8x128xf32>
    %138 = arith.mulf %122, %136 : vector<8x128xf32>
    %139 = arith.addf %137, %138 : vector<8x128xf32>
    %140 = math.tanh %139 : vector<8x128xf32>
    %141 = arith.mulf %134, %140 : vector<8x128xf32>
    %142 = arith.index_cast %c3_i32 : i32 to index
    %c0_36 = arith.constant 0 : index
    %c0_37 = arith.constant 0 : index
    %143 = vector.load %arg5[%142, %c0_36, %c0_37] : memref<8x8x128xf32, #tpu.memory_space<vmem>>, vector<1x8x128xf32>
    %144 = vector.shape_cast %143 : vector<1x8x128xf32> to vector<8x128xf32>
    %145 = vector.shape_cast %141 : vector<8x128xf32> to vector<1x8x128xf32>
    tpu.vector_store %arg5[%142, %c0_36, %c0_37], %145 {strides = array<i32>} : memref<8x8x128xf32, #tpu.memory_space<vmem>>, vector<1x8x128xf32>,
    %c4_i32 = arith.constant 4 : i32
    %146 = arith.index_cast %c4_i32 : i32 to index
    %c0_38 = arith.constant 0 : index
    %c0_39 = arith.constant 0 : index
    %147 = vector.load %arg1[%146, %c0_38, %c0_39] : memref<8x8x512xf32, #tpu.memory_space<vmem>>, vector<1x8x512xf32>
    %148 = vector.shape_cast %147 : vector<1x8x512xf32> to vector<8x512xf32>
    %149 = arith.truncf %141 : vector<8x128xf32> to vector<8x128xbf16>
    %cst_40 = arith.constant dense<0.000000e+00> : vector<8x512xf32>
    %150 = tpu.matmul %149, %3, %cst_40 {dimension_numbers = #tpu.dot_dimension_numbers<[1], [0], [0], [1], [0, 0, 1, 1], [], []>} : vector<8x128xbf16>, vector<128x512xbf16>, vector<8x512xf32> -> vector<8x512xf32>
    %151 = arith.addf %148, %150 : vector<8x512xf32>
    %152 = vector.extract_strided_slice %151 {offsets = [0, 0], sizes = [8, 128], strides = [1, 1]} : vector<8x512xf32> to vector<8x128xf32>
    %153 = arith.negf %152 : vector<8x128xf32>
    %154 = math.exp %153 : vector<8x128xf32>
    %cst_41 = arith.constant 1.000000e+00 : f32
    %155 = vector.broadcast %cst_41 : f32 to vector<8x128xf32>
    %156 = arith.addf %155, %154 : vector<8x128xf32>
    %157 = arith.divf %155, %156 : vector<8x128xf32>
    %158 = vector.extract_strided_slice %151 {offsets = [0, 128], sizes = [8, 128], strides = [1, 1]} : vector<8x512xf32> to vector<8x128xf32>
    %159 = arith.negf %158 : vector<8x128xf32>
    %160 = math.exp %159 : vector<8x128xf32>
    %cst_42 = arith.constant 1.000000e+00 : f32
    %161 = vector.broadcast %cst_42 : f32 to vector<8x128xf32>
    %162 = arith.addf %161, %160 : vector<8x128xf32>
    %163 = arith.divf %161, %162 : vector<8x128xf32>
    %164 = vector.extract_strided_slice %151 {offsets = [0, 256], sizes = [8, 128], strides = [1, 1]} : vector<8x512xf32> to vector<8x128xf32>
    %165 = arith.negf %164 : vector<8x128xf32>
    %166 = math.exp %165 : vector<8x128xf32>
    %cst_43 = arith.constant 1.000000e+00 : f32
    %167 = vector.broadcast %cst_43 : f32 to vector<8x128xf32>
    %168 = arith.addf %167, %166 : vector<8x128xf32>
    %169 = arith.divf %167, %168 : vector<8x128xf32>
    %170 = vector.extract_strided_slice %151 {offsets = [0, 384], sizes = [8, 128], strides = [1, 1]} : vector<8x512xf32> to vector<8x128xf32>
    %171 = math.tanh %170 : vector<8x128xf32>
    %172 = arith.mulf %163, %139 : vector<8x128xf32>
    %173 = arith.mulf %157, %171 : vector<8x128xf32>
    %174 = arith.addf %172, %173 : vector<8x128xf32>
    %175 = math.tanh %174 : vector<8x128xf32>
    %176 = arith.mulf %169, %175 : vector<8x128xf32>
    %177 = arith.index_cast %c4_i32 : i32 to index
    %c0_44 = arith.constant 0 : index
    %c0_45 = arith.constant 0 : index
    %178 = vector.load %arg5[%177, %c0_44, %c0_45] : memref<8x8x128xf32, #tpu.memory_space<vmem>>, vector<1x8x128xf32>
    %179 = vector.shape_cast %178 : vector<1x8x128xf32> to vector<8x128xf32>
    %180 = vector.shape_cast %176 : vector<8x128xf32> to vector<1x8x128xf32>
    tpu.vector_store %arg5[%177, %c0_44, %c0_45], %180 {strides = array<i32>} : memref<8x8x128xf32, #tpu.memory_space<vmem>>, vector<1x8x128xf32>,
    %c5_i32 = arith.constant 5 : i32
    %181 = arith.index_cast %c5_i32 : i32 to index
    %c0_46 = arith.constant 0 : index
    %c0_47 = arith.constant 0 : index
    %182 = vector.load %arg1[%181, %c0_46, %c0_47] : memref<8x8x512xf32, #tpu.memory_space<vmem>>, vector<1x8x512xf32>
    %183 = vector.shape_cast %182 : vector<1x8x512xf32> to vector<8x512xf32>
    %184 = arith.truncf %176 : vector<8x128xf32> to vector<8x128xbf16>
    %cst_48 = arith.constant dense<0.000000e+00> : vector<8x512xf32>
    %185 = tpu.matmul %184, %3, %cst_48 {dimension_numbers = #tpu.dot_dimension_numbers<[1], [0], [0], [1], [0, 0, 1, 1], [], []>} : vector<8x128xbf16>, vector<128x512xbf16>, vector<8x512xf32> -> vector<8x512xf32>
    %186 = arith.addf %183, %185 : vector<8x512xf32>
    %187 = vector.extract_strided_slice %186 {offsets = [0, 0], sizes = [8, 128], strides = [1, 1]} : vector<8x512xf32> to vector<8x128xf32>
    %188 = arith.negf %187 : vector<8x128xf32>
    %189 = math.exp %188 : vector<8x128xf32>
    %cst_49 = arith.constant 1.000000e+00 : f32
    %190 = vector.broadcast %cst_49 : f32 to vector<8x128xf32>
    %191 = arith.addf %190, %189 : vector<8x128xf32>
    %192 = arith.divf %190, %191 : vector<8x128xf32>
    %193 = vector.extract_strided_slice %186 {offsets = [0, 128], sizes = [8, 128], strides = [1, 1]} : vector<8x512xf32> to vector<8x128xf32>
    %194 = arith.negf %193 : vector<8x128xf32>
    %195 = math.exp %194 : vector<8x128xf32>
    %cst_50 = arith.constant 1.000000e+00 : f32
    %196 = vector.broadcast %cst_50 : f32 to vector<8x128xf32>
    %197 = arith.addf %196, %195 : vector<8x128xf32>
    %198 = arith.divf %196, %197 : vector<8x128xf32>
    %199 = vector.extract_strided_slice %186 {offsets = [0, 256], sizes = [8, 128], strides = [1, 1]} : vector<8x512xf32> to vector<8x128xf32>
    %200 = arith.negf %199 : vector<8x128xf32>
    %201 = math.exp %200 : vector<8x128xf32>
    %cst_51 = arith.constant 1.000000e+00 : f32
    %202 = vector.broadcast %cst_51 : f32 to vector<8x128xf32>
    %203 = arith.addf %202, %201 : vector<8x128xf32>
    %204 = arith.divf %202, %203 : vector<8x128xf32>
    %205 = vector.extract_strided_slice %186 {offsets = [0, 384], sizes = [8, 128], strides = [1, 1]} : vector<8x512xf32> to vector<8x128xf32>
    %206 = math.tanh %205 : vector<8x128xf32>
    %207 = arith.mulf %198, %174 : vector<8x128xf32>
    %208 = arith.mulf %192, %206 : vector<8x128xf32>
    %209 = arith.addf %207, %208 : vector<8x128xf32>
    %210 = math.tanh %209 : vector<8x128xf32>
    %211 = arith.mulf %204, %210 : vector<8x128xf32>
    %212 = arith.index_cast %c5_i32 : i32 to index
    %c0_52 = arith.constant 0 : index
    %c0_53 = arith.constant 0 : index
    %213 = vector.load %arg5[%212, %c0_52, %c0_53] : memref<8x8x128xf32, #tpu.memory_space<vmem>>, vector<1x8x128xf32>
    %214 = vector.shape_cast %213 : vector<1x8x128xf32> to vector<8x128xf32>
    %215 = vector.shape_cast %211 : vector<8x128xf32> to vector<1x8x128xf32>
    tpu.vector_store %arg5[%212, %c0_52, %c0_53], %215 {strides = array<i32>} : memref<8x8x128xf32, #tpu.memory_space<vmem>>, vector<1x8x128xf32>,
    %c6_i32 = arith.constant 6 : i32
    %216 = arith.index_cast %c6_i32 : i32 to index
    %c0_54 = arith.constant 0 : index
    %c0_55 = arith.constant 0 : index
    %217 = vector.load %arg1[%216, %c0_54, %c0_55] : memref<8x8x512xf32, #tpu.memory_space<vmem>>, vector<1x8x512xf32>
    %218 = vector.shape_cast %217 : vector<1x8x512xf32> to vector<8x512xf32>
    %219 = arith.truncf %211 : vector<8x128xf32> to vector<8x128xbf16>
    %cst_56 = arith.constant dense<0.000000e+00> : vector<8x512xf32>
    %220 = tpu.matmul %219, %3, %cst_56 {dimension_numbers = #tpu.dot_dimension_numbers<[1], [0], [0], [1], [0, 0, 1, 1], [], []>} : vector<8x128xbf16>, vector<128x512xbf16>, vector<8x512xf32> -> vector<8x512xf32>
    %221 = arith.addf %218, %220 : vector<8x512xf32>
    %222 = vector.extract_strided_slice %221 {offsets = [0, 0], sizes = [8, 128], strides = [1, 1]} : vector<8x512xf32> to vector<8x128xf32>
    %223 = arith.negf %222 : vector<8x128xf32>
    %224 = math.exp %223 : vector<8x128xf32>
    %cst_57 = arith.constant 1.000000e+00 : f32
    %225 = vector.broadcast %cst_57 : f32 to vector<8x128xf32>
    %226 = arith.addf %225, %224 : vector<8x128xf32>
    %227 = arith.divf %225, %226 : vector<8x128xf32>
    %228 = vector.extract_strided_slice %221 {offsets = [0, 128], sizes = [8, 128], strides = [1, 1]} : vector<8x512xf32> to vector<8x128xf32>
    %229 = arith.negf %228 : vector<8x128xf32>
    %230 = math.exp %229 : vector<8x128xf32>
    %cst_58 = arith.constant 1.000000e+00 : f32
    %231 = vector.broadcast %cst_58 : f32 to vector<8x128xf32>
    %232 = arith.addf %231, %230 : vector<8x128xf32>
    %233 = arith.divf %231, %232 : vector<8x128xf32>
    %234 = vector.extract_strided_slice %221 {offsets = [0, 256], sizes = [8, 128], strides = [1, 1]} : vector<8x512xf32> to vector<8x128xf32>
    %235 = arith.negf %234 : vector<8x128xf32>
    %236 = math.exp %235 : vector<8x128xf32>
    %cst_59 = arith.constant 1.000000e+00 : f32
    %237 = vector.broadcast %cst_59 : f32 to vector<8x128xf32>
    %238 = arith.addf %237, %236 : vector<8x128xf32>
    %239 = arith.divf %237, %238 : vector<8x128xf32>
    %240 = vector.extract_strided_slice %221 {offsets = [0, 384], sizes = [8, 128], strides = [1, 1]} : vector<8x512xf32> to vector<8x128xf32>
    %241 = math.tanh %240 : vector<8x128xf32>
    %242 = arith.mulf %233, %209 : vector<8x128xf32>
    %243 = arith.mulf %227, %241 : vector<8x128xf32>
    %244 = arith.addf %242, %243 : vector<8x128xf32>
    %245 = math.tanh %244 : vector<8x128xf32>
    %246 = arith.mulf %239, %245 : vector<8x128xf32>
    %247 = arith.index_cast %c6_i32 : i32 to index
    %c0_60 = arith.constant 0 : index
    %c0_61 = arith.constant 0 : index
    %248 = vector.load %arg5[%247, %c0_60, %c0_61] : memref<8x8x128xf32, #tpu.memory_space<vmem>>, vector<1x8x128xf32>
    %249 = vector.shape_cast %248 : vector<1x8x128xf32> to vector<8x128xf32>
    %250 = vector.shape_cast %246 : vector<8x128xf32> to vector<1x8x128xf32>
    tpu.vector_store %arg5[%247, %c0_60, %c0_61], %250 {strides = array<i32>} : memref<8x8x128xf32, #tpu.memory_space<vmem>>, vector<1x8x128xf32>,
    %c7_i32 = arith.constant 7 : i32
    %251 = arith.index_cast %c7_i32 : i32 to index
    %c0_62 = arith.constant 0 : index
    %c0_63 = arith.constant 0 : index
    %252 = vector.load %arg1[%251, %c0_62, %c0_63] : memref<8x8x512xf32, #tpu.memory_space<vmem>>, vector<1x8x512xf32>
    %253 = vector.shape_cast %252 : vector<1x8x512xf32> to vector<8x512xf32>
    %254 = arith.truncf %246 : vector<8x128xf32> to vector<8x128xbf16>
    %cst_64 = arith.constant dense<0.000000e+00> : vector<8x512xf32>
    %255 = tpu.matmul %254, %3, %cst_64 {dimension_numbers = #tpu.dot_dimension_numbers<[1], [0], [0], [1], [0, 0, 1, 1], [], []>} : vector<8x128xbf16>, vector<128x512xbf16>, vector<8x512xf32> -> vector<8x512xf32>
    %256 = arith.addf %253, %255 : vector<8x512xf32>
    %257 = vector.extract_strided_slice %256 {offsets = [0, 0], sizes = [8, 128], strides = [1, 1]} : vector<8x512xf32> to vector<8x128xf32>
    %258 = arith.negf %257 : vector<8x128xf32>
    %259 = math.exp %258 : vector<8x128xf32>
    %cst_65 = arith.constant 1.000000e+00 : f32
    %260 = vector.broadcast %cst_65 : f32 to vector<8x128xf32>
    %261 = arith.addf %260, %259 : vector<8x128xf32>
    %262 = arith.divf %260, %261 : vector<8x128xf32>
    %263 = vector.extract_strided_slice %256 {offsets = [0, 128], sizes = [8, 128], strides = [1, 1]} : vector<8x512xf32> to vector<8x128xf32>
    %264 = arith.negf %263 : vector<8x128xf32>
    %265 = math.exp %264 : vector<8x128xf32>
    %cst_66 = arith.constant 1.000000e+00 : f32
    %266 = vector.broadcast %cst_66 : f32 to vector<8x128xf32>
    %267 = arith.addf %266, %265 : vector<8x128xf32>
    %268 = arith.divf %266, %267 : vector<8x128xf32>
    %269 = vector.extract_strided_slice %256 {offsets = [0, 256], sizes = [8, 128], strides = [1, 1]} : vector<8x512xf32> to vector<8x128xf32>
    %270 = arith.negf %269 : vector<8x128xf32>
    %271 = math.exp %270 : vector<8x128xf32>
    %cst_67 = arith.constant 1.000000e+00 : f32
    %272 = vector.broadcast %cst_67 : f32 to vector<8x128xf32>
    %273 = arith.addf %272, %271 : vector<8x128xf32>
    %274 = arith.divf %272, %273 : vector<8x128xf32>
    %275 = vector.extract_strided_slice %256 {offsets = [0, 384], sizes = [8, 128], strides = [1, 1]} : vector<8x512xf32> to vector<8x128xf32>
    %276 = math.tanh %275 : vector<8x128xf32>
    %277 = arith.mulf %268, %244 : vector<8x128xf32>
    %278 = arith.mulf %262, %276 : vector<8x128xf32>
    %279 = arith.addf %277, %278 : vector<8x128xf32>
    %280 = math.tanh %279 : vector<8x128xf32>
    %281 = arith.mulf %274, %280 : vector<8x128xf32>
    %282 = arith.index_cast %c7_i32 : i32 to index
    %c0_68 = arith.constant 0 : index
    %c0_69 = arith.constant 0 : index
    %283 = vector.load %arg5[%282, %c0_68, %c0_69] : memref<8x8x128xf32, #tpu.memory_space<vmem>>, vector<1x8x128xf32>
    %284 = vector.shape_cast %283 : vector<1x8x128xf32> to vector<8x128xf32>
    %285 = vector.shape_cast %281 : vector<8x128xf32> to vector<1x8x128xf32>
    tpu.vector_store %arg5[%282, %c0_68, %c0_69], %285 {strides = array<i32>} : memref<8x8x128xf32, #tpu.memory_space<vmem>>, vector<1x8x128xf32>,
    %c8_i32 = arith.constant 8 : i32
    %c0_70 = arith.constant 0 : index
    %c0_71 = arith.constant 0 : index
    %286 = vector.load %arg8[%c0_70, %c0_71] : memref<8x128xf32, #tpu.memory_space<vmem>>, vector<8x128xf32>
    tpu.vector_store %arg8[%c0_70, %c0_71], %281 {strides = array<i32>} : memref<8x128xf32, #tpu.memory_space<vmem>>, vector<8x128xf32>,
    %c0_72 = arith.constant 0 : index
    %c0_73 = arith.constant 0 : index
    %287 = vector.load %arg9[%c0_72, %c0_73] : memref<8x128xf32, #tpu.memory_space<vmem>>, vector<8x128xf32>
    tpu.vector_store %arg9[%c0_72, %c0_73], %279 {strides = array<i32>} : memref<8x128xf32, #tpu.memory_space<vmem>>, vector<8x128xf32>,
    %c0_i32_74 = arith.constant 0 : i32
    %288 = arith.cmpi eq, %arg0, %c0_i32_74 : i32
    %289 = arith.extui %288 : i1 to i32
    %c0_i32_75 = arith.constant 0 : i32
    %290 = arith.cmpi ne, %289, %c0_i32_75 : i32
    scf.if %290 {
      %c0_76 = arith.constant 0 : index
      %c0_77 = arith.constant 0 : index
      %291 = vector.load %arg6[%c0_76, %c0_77] : memref<8x128xf32, #tpu.memory_space<vmem>>, vector<8x128xf32>
      tpu.vector_store %arg6[%c0_76, %c0_77], %281 {strides = array<i32>} : memref<8x128xf32, #tpu.memory_space<vmem>>, vector<8x128xf32>,
      %c0_78 = arith.constant 0 : index
      %c0_79 = arith.constant 0 : index
      %292 = vector.load %arg7[%c0_78, %c0_79] : memref<8x128xf32, #tpu.memory_space<vmem>>, vector<8x128xf32>
      tpu.vector_store %arg7[%c0_78, %c0_79], %279 {strides = array<i32>} : memref<8x128xf32, #tpu.memory_space<vmem>>, vector<8x128xf32>,
    } else {
    }
    return
  }
  func.func @transform_0(%arg0: i32) -> (i32, i32, i32) {
    %c0_i32 = arith.constant 0 : i32
    %c0_i32_0 = arith.constant 0 : i32
    %c0_i32_1 = arith.constant 0 : i32
    return %arg0, %c0_i32, %c0_i32_0 : i32, i32, i32
  }
  func.func @transform_1(%arg0: i32) -> (i32, i32) {
    %c0_i32 = arith.constant 0 : i32
    %c0_i32_0 = arith.constant 0 : i32
    %c0_i32_1 = arith.constant 0 : i32
    return %c0_i32, %c0_i32_0 : i32, i32
  }
  func.func @transform_2(%arg0: i32) -> (i32, i32) {
    %c0_i32 = arith.constant 0 : i32
    %c0_i32_0 = arith.constant 0 : i32
    %c0_i32_1 = arith.constant 0 : i32
    return %c0_i32, %c0_i32_0 : i32, i32
  }
  func.func @transform_3(%arg0: i32) -> (i32, i32) {
    %c0_i32 = arith.constant 0 : i32
    %c0_i32_0 = arith.constant 0 : i32
    %c0_i32_1 = arith.constant 0 : i32
    return %c0_i32, %c0_i32_0 : i32, i32
  }
  func.func @transform_4(%arg0: i32) -> (i32, i32, i32) {
    %c0_i32 = arith.constant 0 : i32
    %c0_i32_0 = arith.constant 0 : i32
    %c0_i32_1 = arith.constant 0 : i32
    return %arg0, %c0_i32, %c0_i32_0 : i32, i32, i32
  }
  func.func @transform_5(%arg0: i32) -> (i32, i32) {
    %c0_i32 = arith.constant 0 : i32
    %c0_i32_0 = arith.constant 0 : i32
    %c0_i32_1 = arith.constant 0 : i32
    return %c0_i32, %c0_i32_0 : i32, i32
  }
  func.func @transform_6(%arg0: i32) -> (i32, i32) {
    %c0_i32 = arith.constant 0 : i32
    %c0_i32_0 = arith.constant 0 : i32
    %c0_i32_1 = arith.constant 0 : i32
    return %c0_i32, %c0_i32_0 : i32, i32
  }
}

</mosaic_0001>

<bundles_post_ra>
// kernel: lstm_scan.1
= control target key start
LH: loop header
LB: loop body
LE: loop exit
PB: predicated region body
PF: predicated region fallthrough
CT: control target
= control target key end

     0   :  { %v1484_v1 = vmov 0   ;;  %s2172_s1 = inlined_call_operand.vmem [shape: bf16[128,512], index: 1, kind: input, shape index: {}]   ;;  %s2173_s2 = inlined_call_operand.vmem [shape: f32[8,128], index: 2, kind: input, shape index: {}]   ;;  %s2174_s0 = inlined_call_operand.vmem [shape: f32[8,8,512], index: 0, kind: input, shape index: {}]   ;;  %s2175_s3 = inlined_call_operand.vmem [shape: f32[8,128], index: 3, kind: input, shape index: {}]   ;;  %s2176_s4 = inlined_call_operand.vmem [shape: f32[8,8,128], index: 4, kind: output, shape index: {0}]   ;;  %s2177_s6 = inlined_call_operand.vmem [shape: f32[8,128], index: 6, kind: output, shape index: {2}]   ;;  %s2178_s5 = inlined_call_operand.vmem [shape: f32[8,128], index: 5, kind: output, shape index: {1}]  }
   0x1   :  { %v1523_v0 = vld [vmem:[%s2172_s1 + $0x4] ss:$16 sps:$4 sm:$0xff]   ;;  %260 = vmatprep.mubr.bf16.mxu0 %v1484_v1  ;;  %301 = vmatprep.mubr.bf16.mxu1 %v1484_v1  ;;  %v1530_v2 = vld [vmem:[%s2172_s1] ss:$16 sps:$4 sm:$0xff]   ;;  %v1553_v6 = vld [vmem:[%s2172_s1 + $0xc] ss:$16 sps:$4 sm:$0xff]  }
   0x2   :  { %228 = vmatprep.subr.bf16.mxu0 %v1523_v0  ;;  %v1536_v3 = vld [vmem:[%s2172_s1 + $0x24] ss:$16 sps:$4 sm:$0xff]   ;;  %v1542_v4 = vld [vmem:[%s2172_s1 + $0x20] ss:$16 sps:$4 sm:$0xff]   ;;  %v1558_v7 = vld [vmem:[%s2172_s1 + $0x8] ss:$16 sps:$4 sm:$0xff]   ;;  %269 = vmatprep.subr.bf16.mxu1 %v1553_v6 }
   0x3   :  { %229 = vmatpush1.bf16.msra.mxu0 %v1530_v2  ;;  %v1548_v5 = vld [vmem:[%s2172_s1 + $0x44] ss:$16 sps:$4 sm:$0xff]   ;;  %v1564_v8 = vld [vmem:[%s2172_s1 + $0x40] ss:$16 sps:$4 sm:$0xff]   ;;  %270 = vmatpush1.bf16.msra.mxu1 %v1558_v7  ;;  %v1577_v10 = vld [vmem:[%s2172_s1 + $0x2c] ss:$16 sps:$4 sm:$0xff]  }
   0x4   :  { %230 = vmatprep.subr.bf16.mxu0 %v1536_v3  ;;  %v1571_v9 = vld [vmem:[%s2172_s1 + $0x64] ss:$16 sps:$4 sm:$0xff]   ;;  %v1582_v11 = vld [vmem:[%s2172_s1 + $0x28] ss:$16 sps:$4 sm:$0xff]   ;;  %271 = vmatprep.subr.bf16.mxu1 %v1577_v10  ;;  %v1589_v12 = vld [vmem:[%s2172_s1 + $0x60] ss:$16 sps:$4 sm:$0xff]  }
   0x5   :  { %v1594_v13 = vld [vmem:[%s2172_s1 + $0x84] ss:$16 sps:$4 sm:$0xff]   ;;  %v1599_v14 = vld [vmem:[%s2172_s1 + $0x4c] ss:$16 sps:$4 sm:$0xff]   ;;  %v1606_v15 = vld [vmem:[%s2172_s1 + $0x48] ss:$16 sps:$4 sm:$0xff]  }
   0x6   :  { %v1612_v16 = vld [vmem:[%s2172_s1 + $0x6c] ss:$16 sps:$4 sm:$0xff]   ;;  %v1618_v17 = vld [vmem:[%s2172_s1 + $0x80] ss:$16 sps:$4 sm:$0xff]   ;;  %v1624_v18 = vld [vmem:[%s2172_s1 + $0xa4] ss:$16 sps:$4 sm:$0xff]  }
   0x7   :  { %231 = vmatpush1.bf16.msra.mxu0 %v1542_v4  ;;  %272 = vmatpush1.bf16.msra.mxu1 %v1582_v11  ;;  %v1630_v19 = vld [vmem:[%s2172_s1 + $0x68] ss:$16 sps:$4 sm:$0xff]   ;;  %v1636_v20 = vld [vmem:[%s2172_s1 + $0x8c] ss:$16 sps:$4 sm:$0xff]   ;;  %v1641_v21 = vld [vmem:[%s2172_s1 + $0xa0] ss:$16 sps:$4 sm:$0xff]  }
   0x8   :  { %232 = vmatprep.subr.bf16.mxu0 %v1548_v5  ;;  %273 = vmatprep.subr.bf16.mxu1 %v1599_v14  ;;  %v1647_v22 = vld [vmem:[%s2172_s1 + $0xc4] ss:$16 sps:$4 sm:$0xff]   ;;  %v1654_v23 = vld [vmem:[%s2172_s1 + $0x88] ss:$16 sps:$4 sm:$0xff]   ;;  %v1660_v24 = vld [vmem:[%s2172_s1 + $0xac] ss:$16 sps:$4 sm:$0xff]  }
   0x9   :  { %v1666_v25 = vld [vmem:[%s2172_s1 + $0xc0] ss:$16 sps:$4 sm:$0xff]   ;;  %v1672_v26 = vld [vmem:[%s2172_s1 + $0xe4] ss:$16 sps:$4 sm:$0xff]   ;;  %v1678_v27 = vld [vmem:[%s2172_s1 + $0xa8] ss:$16 sps:$4 sm:$0xff]  }
   0xa   :  { %v1684_v28 = vld [vmem:[%s2172_s1 + $0xcc] ss:$16 sps:$4 sm:$0xff]   ;;  %v1690_v29 = vld [vmem:[%s2172_s1 + $0xe0] ss:$16 sps:$4 sm:$0xff]   ;;  %v1700_v31 = vld [vmem:[%s2172_s1 + $0xc8] ss:$16 sps:$4 sm:$0xff]  }
   0xb   :  { %233 = vmatpush1.bf16.msra.mxu0 %v1564_v8  ;;  %274 = vmatpush1.bf16.msra.mxu1 %v1606_v15  ;;  %v25_v30 = vld [vmem:[%s2173_s2] sm:$0xff]  ;;  %v1706_v32 = vld [vmem:[%s2172_s1 + $0xec] ss:$16 sps:$4 sm:$0xff]   ;;  %v1713_v34 = vld [vmem:[%s2172_s1 + $0xe8] ss:$16 sps:$4 sm:$0xff]  }
   0xc   :  { %234 = vmatprep.subr.bf16.mxu0 %v1571_v9  ;;  %275 = vmatprep.subr.bf16.mxu1 %v1612_v16  ;;  %v67_v33 = vpack.c.bf16 %v25_v30, %v25_v30  ;;  %v63_v35 = vld [vmem:[%s2174_s0] sm:$0xff]  ;;  %v64_v36 = vld [vmem:[%s2174_s0 + $0x8] sm:$0xff]  ;;  %v65_v45 = vld [vmem:[%s2174_s0 + $0x10] sm:$0xff] }
   0xd   :  { %v66_v51 = vld [vmem:[%s2174_s0 + $0x18] sm:$0xff]  ;;  %v27_v60 = vld [vmem:[%s2175_s3] sm:$0xff] }
   0xf   :  { %235 = vmatpush1.bf16.msra.mxu0 %v1589_v12  ;;  %276 = vmatpush1.bf16.msra.mxu1 %v1630_v19 }
  0x10   :  { %236 = vmatprep.subr.bf16.mxu0 %v1594_v13  ;;  %277 = vmatprep.subr.bf16.mxu1 %v1636_v20 }
  0x13   :  { %237 = vmatpush1.bf16.msra.mxu0 %v1618_v17  ;;  %278 = vmatpush1.bf16.msra.mxu1 %v1654_v23 }
  0x14   :  { %238 = vmatprep.subr.bf16.mxu0 %v1624_v18  ;;  %279 = vmatprep.subr.bf16.mxu1 %v1660_v24 }
  0x17   :  { %239 = vmatpush1.bf16.msra.mxu0 %v1641_v21  ;;  %280 = vmatpush1.bf16.msra.mxu1 %v1678_v27 }
  0x18   :  { %240 = vmatprep.subr.bf16.mxu0 %v1647_v22  ;;  %281 = vmatprep.subr.bf16.mxu1 %v1684_v28 }
  0x1b   :  { %241 = vmatpush1.bf16.msra.mxu0 %v1666_v25  ;;  %282 = vmatpush1.bf16.msra.mxu1 %v1700_v31 }
  0x1c   :  { %242 = vmatprep.subr.bf16.mxu0 %v1672_v26  ;;  %283 = vmatprep.subr.bf16.mxu1 %v1706_v32 }
  0x1f   :  { %243 = vmatpush1.bf16.msra.mxu0 %v1690_v29  ;;  %284 = vmatpush1.bf16.msra.mxu1 %v1713_v34 }
  0x20   :  { %345 = vmatprep.subr.bf16.mxu0 %v1523_v0  ;;  %386 = vmatprep.subr.bf16.mxu1 %v1553_v6 }
  0x22   :  { %261 = vmatmul.mubr.bf16.vlgmr.msra.gmra.mrb[0].mxu0 %v67_v33  ;;  %302 = vmatmul.mubr.bf16.vlgmr.msra.gmra.mrb[0].mxu1 %v67_v33 }
  0x23   :  { %346 = vmatpush1.bf16.msra.mxu0 %v1530_v2  ;;  %377 = vmatprep.mubr.bf16.mxu0 %v1484_v1 }
  0x24   :  { %347 = vmatprep.subr.bf16.mxu0 %v1536_v3  ;;  %387 = vmatpush1.bf16.msra.mxu1 %v1558_v7 }
  0x25   :  { %388 = vmatprep.subr.bf16.mxu1 %v1577_v10  ;;  %418 = vmatprep.mubr.bf16.mxu1 %v1484_v1 }
  0x27   :  { %348 = vmatpush1.bf16.msra.mxu0 %v1542_v4 }
  0x28   :  { %349 = vmatprep.subr.bf16.mxu0 %v1548_v5  ;;  %389 = vmatpush1.bf16.msra.mxu1 %v1582_v11 }
  0x29   :  { %390 = vmatprep.subr.bf16.mxu1 %v1599_v14 }
  0x2b   :  { %350 = vmatpush1.bf16.msra.mxu0 %v1564_v8 }
  0x2c   :  { %351 = vmatprep.subr.bf16.mxu0 %v1571_v9  ;;  %391 = vmatpush1.bf16.msra.mxu1 %v1606_v15 }
  0x2d   :  { %392 = vmatprep.subr.bf16.mxu1 %v1612_v16 }
  0x2f   :  { %352 = vmatpush1.bf16.msra.mxu0 %v1589_v12 }
  0x30   :  { %353 = vmatprep.subr.bf16.mxu0 %v1594_v13  ;;  %393 = vmatpush1.bf16.msra.mxu1 %v1630_v19 }
  0x31   :  { %394 = vmatprep.subr.bf16.mxu1 %v1636_v20 }
  0x33   :  { %354 = vmatpush1.bf16.msra.mxu0 %v1618_v17 }
  0x34   :  { %355 = vmatprep.subr.bf16.mxu0 %v1624_v18  ;;  %395 = vmatpush1.bf16.msra.mxu1 %v1654_v23 }
  0x35   :  { %396 = vmatprep.subr.bf16.mxu1 %v1660_v24 }
  0x37   :  { %356 = vmatpush1.bf16.msra.mxu0 %v1641_v21 }
  0x38   :  { %357 = vmatprep.subr.bf16.mxu0 %v1647_v22  ;;  %397 = vmatpush1.bf16.msra.mxu1 %v1678_v27 }
  0x39   :  { %398 = vmatprep.subr.bf16.mxu1 %v1684_v28 }
  0x3b   :  { %358 = vmatpush1.bf16.msra.mxu0 %v1666_v25 }
  0x3c   :  { %359 = vmatprep.subr.bf16.mxu0 %v1672_v26  ;;  %399 = vmatpush1.bf16.msra.mxu1 %v1700_v31 }
  0x3d   :  { %400 = vmatprep.subr.bf16.mxu1 %v1706_v32 }
  0x3f   :  { %360 = vmatpush1.bf16.msra.mxu0 %v1690_v29 }
  0x40   :  { %463 = vmatprep.subr.bf16.mxu0 %v1523_v0  ;;  %401 = vmatpush1.bf16.msra.mxu1 %v1713_v34 }
  0x41   :  { %504 = vmatprep.subr.bf16.mxu1 %v1553_v6 }
  0xf5   :  { %v262_v37 = vpop.f32.mrb[0].mxu0  ;;  %v303_v46 = vpop.f32.mrb[0].mxu1 }
  0xf6   :  { %v310_v38 = vadd.f32 %v262_v37, %v63_v35  ;;  %v264_v39 = vpop.f32.mrb[1].mxu0  ;;  %v305_v47 = vpop.f32.mrb[1].mxu1  ;;  %v312_v48 = vadd.f32 %v303_v46, %v65_v45 }
  0xf7   :  { %v311_v40 = vadd.f32 %v264_v39, %v64_v36  ;;  %v266_v41 = vpop.f32.mrb[2].mxu0  ;;  %v307_v49 = vpop.f32.mrb[2].mxu1  ;;  %v313_v53 = vadd.f32 %v305_v47, %v66_v51 }
  0xf8   :  { %v1216_v42 = vmul.f32 -1.442695, %v310_v38  ;;  %v267_v43 = vpop.f32.mrb[3].mxu0  ;;  %v308_v50 = vpop.f32.mrb[3].mxu1  ;;  %v1218_v52 = vmul.f32 -1.442695, %v312_v48 }
  0xf9   :  { %v1217_v44 = vmul.f32 -1.442695, %v311_v40  ;;  %v1219_v40 = vld [vmem:[%s2174_s0 + $0x20] sm:$0xff]  ;;  %v1220_v41 = vld [vmem:[%s2174_s0 + $0x28] sm:$0xff] }
  0xfa   :  { %1324 = vpow2.f32 %v1216_v42 }
  0xfb   :  { %1326 = vpow2.f32 %v1217_v44 }
  0xfc   :  { %1328 = vpow2.f32 %v1218_v52 }
  0xfd   :  { %1330 = vtanh.f32 %v313_v53 }
 0x104   :  { %v1325_v54 = vpop.eup %1324 }
 0x105   :  { %v1327_v55 = vpop.eup %1326  ;;  %v317_v56 = vadd.f32 1.0, %v1325_v54  ;;  %v1221_v54 = vld [vmem:[%s2174_s0 + $0x30] sm:$0xff] }
 0x106   :  { %v323_v57 = vadd.f32 1.0, %v1327_v55  ;;  %v1329_v58 = vpop.eup %1328 }
 0x107   :  { %1332 = vrcp.f32 %v317_v56  ;;  %v1331_v59 = vpop.eup %1330  ;;  %v329_v62 = vadd.f32 1.0, %v1329_v58  ;;  %v1222_v56 = vld [vmem:[%s2174_s0 + $0x38] sm:$0xff] }
 0x108   :  { %1334 = vrcp.f32 %v323_v57 }
 0x109   :  { %1336 = vrcp.f32 %v329_v62 }
 0x111   :  { %v1333_v61 = vpop.eup %1332 }
 0x112   :  { %v1335_v63 = vpop.eup %1334  ;;  %v334_v30 = vmul.f32 %v1333_v61, %v1331_v59 }
 0x113   :  { %v333_v33 = vmul.f32 %v1335_v63, %v27_v60  ;;  %v1337_v36 = vpop.eup %1336 }
 0x115   :  { %v1768_v35 = vadd.f32 %v334_v30, %v333_v33 }
 0x117   :  { %1338 = vtanh.f32 %v1768_v35 }
 0x121   :  { %v1339_v37 = vpop.eup %1338 }
 0x122   :  { %v337_v38 = vmul.f32 %v1339_v37, %v1337_v36 }
 0x124   :  { %338 = vst [vmem:[%s2176_s4] sm:$0xff] %v337_v38  ;;  %v344_v39 = vpack.c.bf16 %v337_v38, %v337_v38 }
 0x126   :  { %378 = vmatmul.mubr.bf16.vlgmr.msra.gmra.mrb[4].mxu0 %v344_v39  ;;  %419 = vmatmul.mubr.bf16.vlgmr.msra.gmra.mrb[4].mxu1 %v344_v39 }
 0x127   :  { %464 = vmatpush1.bf16.msra.mxu0 %v1530_v2  ;;  %505 = vmatpush1.bf16.msra.mxu1 %v1558_v7 }
 0x128   :  { %465 = vmatprep.subr.bf16.mxu0 %v1536_v3  ;;  %506 = vmatprep.subr.bf16.mxu1 %v1577_v10 }
 0x129   :  { %495 = vmatprep.mubr.bf16.mxu0 %v1484_v1  ;;  %536 = vmatprep.mubr.bf16.mxu1 %v1484_v1 }
 0x12b   :  { %466 = vmatpush1.bf16.msra.mxu0 %v1542_v4  ;;  %507 = vmatpush1.bf16.msra.mxu1 %v1582_v11 }
 0x12c   :  { %467 = vmatprep.subr.bf16.mxu0 %v1548_v5  ;;  %508 = vmatprep.subr.bf16.mxu1 %v1599_v14 }
 0x12f   :  { %468 = vmatpush1.bf16.msra.mxu0 %v1564_v8  ;;  %509 = vmatpush1.bf16.msra.mxu1 %v1606_v15 }
 0x130   :  { %469 = vmatprep.subr.bf16.mxu0 %v1571_v9  ;;  %510 = vmatprep.subr.bf16.mxu1 %v1612_v16 }
 0x133   :  { %470 = vmatpush1.bf16.msra.mxu0 %v1589_v12  ;;  %511 = vmatpush1.bf16.msra.mxu1 %v1630_v19 }
 0x134   :  { %471 = vmatprep.subr.bf16.mxu0 %v1594_v13  ;;  %512 = vmatprep.subr.bf16.mxu1 %v1636_v20 }
 0x137   :  { %472 = vmatpush1.bf16.msra.mxu0 %v1618_v17  ;;  %513 = vmatpush1.bf16.msra.mxu1 %v1654_v23 }
 0x138   :  { %473 = vmatprep.subr.bf16.mxu0 %v1624_v18  ;;  %514 = vmatprep.subr.bf16.mxu1 %v1660_v24 }
 0x13b   :  { %474 = vmatpush1.bf16.msra.mxu0 %v1641_v21  ;;  %515 = vmatpush1.bf16.msra.mxu1 %v1678_v27 }
 0x13c   :  { %475 = vmatprep.subr.bf16.mxu0 %v1647_v22  ;;  %516 = vmatprep.subr.bf16.mxu1 %v1684_v28 }
 0x13f   :  { %476 = vmatpush1.bf16.msra.mxu0 %v1666_v25  ;;  %517 = vmatpush1.bf16.msra.mxu1 %v1700_v31 }
 0x140   :  { %477 = vmatprep.subr.bf16.mxu0 %v1672_v26  ;;  %518 = vmatprep.subr.bf16.mxu1 %v1706_v32 }
 0x143   :  { %478 = vmatpush1.bf16.msra.mxu0 %v1690_v29  ;;  %519 = vmatpush1.bf16.msra.mxu1 %v1713_v34 }
 0x144   :  { %581 = vmatprep.subr.bf16.mxu0 %v1523_v0  ;;  %622 = vmatprep.subr.bf16.mxu1 %v1553_v6 }
 0x1f9   :  { %v379_v42 = vpop.f32.mrb[4].mxu0  ;;  %v420_v43 = vpop.f32.mrb[4].mxu1 }
 0x1fa   :  { %v427_v44 = vadd.f32 %v1219_v40, %v379_v42  ;;  %v381_v45 = vpop.f32.mrb[5].mxu0  ;;  %v422_v46 = vpop.f32.mrb[5].mxu1  ;;  %v429_v55 = vadd.f32 %v1221_v54, %v420_v43 }
 0x1fb   :  { %v428_v47 = vadd.f32 %v1220_v41, %v381_v45  ;;  %v383_v48 = vpop.f32.mrb[6].mxu0  ;;  %v424_v49 = vpop.f32.mrb[6].mxu1  ;;  %v430_v57 = vadd.f32 %v1222_v56, %v422_v46  ;;  %v1228_v45 = vld [vmem:[%s2174_s0 + $0x48] sm:$0xff] }
 0x1fc   :  { %v1223_v50 = vmul.f32 -1.442695, %v427_v44  ;;  %v384_v51 = vpop.f32.mrb[7].mxu0  ;;  %v425_v52 = vpop.f32.mrb[7].mxu1  ;;  %v1225_v58 = vmul.f32 -1.442695, %v429_v55 }
 0x1fd   :  { %v1224_v53 = vmul.f32 -1.442695, %v428_v47 }
 0x1fe   :  { %1340 = vpow2.f32 %v1223_v50 }
 0x1ff   :  { %1342 = vpow2.f32 %v1224_v53 }
 0x200   :  { %1344 = vtanh.f32 %v430_v57 }
 0x201   :  { %1346 = vpow2.f32 %v1225_v58  ;;  %v1229_v58 = vld [vmem:[%s2174_s0 + $0x50] sm:$0xff] }
 0x208   :  { %v1341_v59 = vpop.eup %1340 }
 0x209   :  { %v434_v60 = vadd.f32 1.0, %v1341_v59  ;;  %v1343_v61 = vpop.eup %1342 }
 0x20a   :  { %v440_v62 = vadd.f32 1.0, %v1343_v61  ;;  %v1345_v63 = vpop.eup %1344 }
 0x20b   :  { %1348 = vrcp.f32 %v434_v60  ;;  %v1347_v30 = vpop.eup %1346  ;;  %v1230_v60 = vld [vmem:[%s2174_s0 + $0x58] sm:$0xff] }
 0x20c   :  { %1350 = vrcp.f32 %v440_v62  ;;  %v446_v38 = vadd.f32 1.0, %v1347_v30 }
 0x20e   :  { %1352 = vrcp.f32 %v446_v38 }
 0x215   :  { %v1349_v33 = vpop.eup %1348 }
 0x216   :  { %v451_v36 = vmul.f32 %v1349_v33, %v1345_v63  ;;  %v1351_v37 = vpop.eup %1350 }
 0x217   :  { %v450_v39 = vmul.f32 %v1351_v37, %v1768_v35  ;;  %v1227_v35 = vld [vmem:[%s2174_s0 + $0x40] sm:$0xff] }
 0x218   :  { %v1353_v41 = vpop.eup %1352 }
 0x219   :  { %v1821_v40 = vadd.f32 %v451_v36, %v450_v39 }
 0x21b   :  { %1354 = vtanh.f32 %v1821_v40 }
 0x225   :  { %v1355_v42 = vpop.eup %1354 }
 0x226   :  { %v454_v43 = vmul.f32 %v1355_v42, %v1353_v41 }
 0x228   :  { %1226 = vst [vmem:[%s2176_s4 + $0x8] sm:$0xff] %v454_v43  ;;  %v462_v44 = vpack.c.bf16 %v454_v43, %v454_v43 }
 0x22a   :  { %496 = vmatmul.mubr.bf16.vlgmr.msra.gmra.mrb[8].mxu0 %v462_v44  ;;  %537 = vmatmul.mubr.bf16.vlgmr.msra.gmra.mrb[8].mxu1 %v462_v44 }
 0x22b   :  { %582 = vmatpush1.bf16.msra.mxu0 %v1530_v2  ;;  %623 = vmatpush1.bf16.msra.mxu1 %v1558_v7 }
 0x22c   :  { %583 = vmatprep.subr.bf16.mxu0 %v1536_v3  ;;  %624 = vmatprep.subr.bf16.mxu1 %v1577_v10 }
 0x22d   :  { %613 = vmatprep.mubr.bf16.mxu0 %v1484_v1  ;;  %654 = vmatprep.mubr.bf16.mxu1 %v1484_v1 }
 0x22f   :  { %584 = vmatpush1.bf16.msra.mxu0 %v1542_v4  ;;  %625 = vmatpush1.bf16.msra.mxu1 %v1582_v11 }
 0x230   :  { %585 = vmatprep.subr.bf16.mxu0 %v1548_v5  ;;  %626 = vmatprep.subr.bf16.mxu1 %v1599_v14 }
 0x233   :  { %586 = vmatpush1.bf16.msra.mxu0 %v1564_v8  ;;  %627 = vmatpush1.bf16.msra.mxu1 %v1606_v15 }
 0x234   :  { %587 = vmatprep.subr.bf16.mxu0 %v1571_v9  ;;  %628 = vmatprep.subr.bf16.mxu1 %v1612_v16 }
 0x237   :  { %588 = vmatpush1.bf16.msra.mxu0 %v1589_v12  ;;  %629 = vmatpush1.bf16.msra.mxu1 %v1630_v19 }
 0x238   :  { %589 = vmatprep.subr.bf16.mxu0 %v1594_v13  ;;  %630 = vmatprep.subr.bf16.mxu1 %v1636_v20 }
 0x23b   :  { %590 = vmatpush1.bf16.msra.mxu0 %v1618_v17  ;;  %631 = vmatpush1.bf16.msra.mxu1 %v1654_v23 }
 0x23c   :  { %591 = vmatprep.subr.bf16.mxu0 %v1624_v18  ;;  %632 = vmatprep.subr.bf16.mxu1 %v1660_v24 }
 0x23f   :  { %592 = vmatpush1.bf16.msra.mxu0 %v1641_v21  ;;  %633 = vmatpush1.bf16.msra.mxu1 %v1678_v27 }
 0x240   :  { %593 = vmatprep.subr.bf16.mxu0 %v1647_v22  ;;  %634 = vmatprep.subr.bf16.mxu1 %v1684_v28 }
 0x243   :  { %594 = vmatpush1.bf16.msra.mxu0 %v1666_v25  ;;  %635 = vmatpush1.bf16.msra.mxu1 %v1700_v31 }
 0x244   :  { %595 = vmatprep.subr.bf16.mxu0 %v1672_v26  ;;  %636 = vmatprep.subr.bf16.mxu1 %v1706_v32 }
 0x247   :  { %596 = vmatpush1.bf16.msra.mxu0 %v1690_v29  ;;  %637 = vmatpush1.bf16.msra.mxu1 %v1713_v34 }
 0x248   :  { %699 = vmatprep.subr.bf16.mxu0 %v1523_v0  ;;  %740 = vmatprep.subr.bf16.mxu1 %v1553_v6 }
 0x2fd   :  { %v497_v46 = vpop.f32.mrb[8].mxu0  ;;  %v538_v47 = vpop.f32.mrb[8].mxu1 }
 0x2fe   :  { %v545_v48 = vadd.f32 %v1227_v35, %v497_v46  ;;  %v499_v49 = vpop.f32.mrb[9].mxu0  ;;  %v540_v50 = vpop.f32.mrb[9].mxu1  ;;  %v547_v59 = vadd.f32 %v1229_v58, %v538_v47 }
 0x2ff   :  { %v546_v51 = vadd.f32 %v1228_v45, %v499_v49  ;;  %v501_v52 = vpop.f32.mrb[10].mxu0  ;;  %v542_v53 = vpop.f32.mrb[10].mxu1  ;;  %v548_v61 = vadd.f32 %v1230_v60, %v540_v50  ;;  %v1236_v49 = vld [vmem:[%s2174_s0 + $0x68] sm:$0xff] }
 0x300   :  { %v1231_v54 = vmul.f32 -1.442695, %v545_v48  ;;  %v502_v55 = vpop.f32.mrb[11].mxu0  ;;  %v543_v56 = vpop.f32.mrb[11].mxu1  ;;  %v1233_v62 = vmul.f32 -1.442695, %v547_v59 }
 0x301   :  { %v1232_v57 = vmul.f32 -1.442695, %v546_v51 }
 0x302   :  { %1356 = vpow2.f32 %v1231_v54 }
 0x303   :  { %1358 = vpow2.f32 %v1232_v57 }
 0x304   :  { %1360 = vtanh.f32 %v548_v61 }
 0x305   :  { %1362 = vpow2.f32 %v1233_v62  ;;  %v1237_v62 = vld [vmem:[%s2174_s0 + $0x70] sm:$0xff] }
 0x30c   :  { %v1357_v63 = vpop.eup %1356 }
 0x30d   :  { %v552_v30 = vadd.f32 1.0, %v1357_v63  ;;  %v1359_v33 = vpop.eup %1358 }
 0x30e   :  { %v558_v36 = vadd.f32 1.0, %v1359_v33  ;;  %v1361_v37 = vpop.eup %1360 }
 0x30f   :  { %1364 = vrcp.f32 %v552_v30  ;;  %v1363_v38 = vpop.eup %1362  ;;  %v1238_v30 = vld [vmem:[%s2174_s0 + $0x78] sm:$0xff] }
 0x310   :  { %1366 = vrcp.f32 %v558_v36  ;;  %v564_v43 = vadd.f32 1.0, %v1363_v38 }
 0x312   :  { %1368 = vrcp.f32 %v564_v43 }
 0x319   :  { %v1365_v39 = vpop.eup %1364 }
 0x31a   :  { %v569_v41 = vmul.f32 %v1365_v39, %v1361_v37  ;;  %v1367_v42 = vpop.eup %1366 }
 0x31b   :  { %v568_v44 = vmul.f32 %v1367_v42, %v1821_v40  ;;  %v1235_v40 = vld [vmem:[%s2174_s0 + $0x60] sm:$0xff] }
 0x31c   :  { %v1369_v45 = vpop.eup %1368 }
 0x31d   :  { %v1874_v35 = vadd.f32 %v569_v41, %v568_v44 }
 0x31f   :  { %1370 = vtanh.f32 %v1874_v35 }
 0x329   :  { %v1371_v46 = vpop.eup %1370 }
 0x32a   :  { %v572_v47 = vmul.f32 %v1371_v46, %v1369_v45 }
 0x32c   :  { %1234 = vst [vmem:[%s2176_s4 + $0x10] sm:$0xff] %v572_v47  ;;  %v580_v48 = vpack.c.bf16 %v572_v47, %v572_v47 }
 0x32e   :  { %614 = vmatmul.mubr.bf16.vlgmr.msra.gmra.mrb[12].mxu0 %v580_v48  ;;  %655 = vmatmul.mubr.bf16.vlgmr.msra.gmra.mrb[12].mxu1 %v580_v48 }
 0x32f   :  { %700 = vmatpush1.bf16.msra.mxu0 %v1530_v2  ;;  %741 = vmatpush1.bf16.msra.mxu1 %v1558_v7 }
 0x330   :  { %701 = vmatprep.subr.bf16.mxu0 %v1536_v3  ;;  %742 = vmatprep.subr.bf16.mxu1 %v1577_v10 }
 0x331   :  { %731 = vmatprep.mubr.bf16.mxu0 %v1484_v1  ;;  %772 = vmatprep.mubr.bf16.mxu1 %v1484_v1 }
 0x333   :  { %702 = vmatpush1.bf16.msra.mxu0 %v1542_v4  ;;  %743 = vmatpush1.bf16.msra.mxu1 %v1582_v11 }
 0x334   :  { %703 = vmatprep.subr.bf16.mxu0 %v1548_v5  ;;  %744 = vmatprep.subr.bf16.mxu1 %v1599_v14 }
 0x337   :  { %704 = vmatpush1.bf16.msra.mxu0 %v1564_v8  ;;  %745 = vmatpush1.bf16.msra.mxu1 %v1606_v15 }
 0x338   :  { %705 = vmatprep.subr.bf16.mxu0 %v1571_v9  ;;  %746 = vmatprep.subr.bf16.mxu1 %v1612_v16 }
 0x33b   :  { %706 = vmatpush1.bf16.msra.mxu0 %v1589_v12  ;;  %747 = vmatpush1.bf16.msra.mxu1 %v1630_v19 }
 0x33c   :  { %707 = vmatprep.subr.bf16.mxu0 %v1594_v13  ;;  %748 = vmatprep.subr.bf16.mxu1 %v1636_v20 }
 0x33f   :  { %708 = vmatpush1.bf16.msra.mxu0 %v1618_v17  ;;  %749 = vmatpush1.bf16.msra.mxu1 %v1654_v23 }
 0x340   :  { %709 = vmatprep.subr.bf16.mxu0 %v1624_v18  ;;  %750 = vmatprep.subr.bf16.mxu1 %v1660_v24 }
 0x343   :  { %710 = vmatpush1.bf16.msra.mxu0 %v1641_v21  ;;  %751 = vmatpush1.bf16.msra.mxu1 %v1678_v27 }
 0x344   :  { %711 = vmatprep.subr.bf16.mxu0 %v1647_v22  ;;  %752 = vmatprep.subr.bf16.mxu1 %v1684_v28 }
 0x347   :  { %712 = vmatpush1.bf16.msra.mxu0 %v1666_v25  ;;  %753 = vmatpush1.bf16.msra.mxu1 %v1700_v31 }
 0x348   :  { %713 = vmatprep.subr.bf16.mxu0 %v1672_v26  ;;  %754 = vmatprep.subr.bf16.mxu1 %v1706_v32 }
 0x34b   :  { %714 = vmatpush1.bf16.msra.mxu0 %v1690_v29  ;;  %755 = vmatpush1.bf16.msra.mxu1 %v1713_v34 }
 0x34c   :  { %817 = vmatprep.subr.bf16.mxu0 %v1523_v0  ;;  %858 = vmatprep.subr.bf16.mxu1 %v1553_v6 }
 0x401   :  { %v615_v50 = vpop.f32.mrb[12].mxu0  ;;  %v656_v51 = vpop.f32.mrb[12].mxu1 }
 0x402   :  { %v663_v52 = vadd.f32 %v1235_v40, %v615_v50  ;;  %v617_v53 = vpop.f32.mrb[13].mxu0  ;;  %v658_v54 = vpop.f32.mrb[13].mxu1  ;;  %v665_v63 = vadd.f32 %v1237_v62, %v656_v51 }
 0x403   :  { %v664_v55 = vadd.f32 %v1236_v49, %v617_v53  ;;  %v619_v56 = vpop.f32.mrb[14].mxu0  ;;  %v660_v57 = vpop.f32.mrb[14].mxu1  ;;  %v666_v33 = vadd.f32 %v1238_v30, %v658_v54  ;;  %v1244_v53 = vld [vmem:[%s2174_s0 + $0x88] sm:$0xff]  ;;  %v1245_v30 = vld [vmem:[%s2174_s0 + $0x90] sm:$0xff] }
 0x404   :  { %v1239_v58 = vmul.f32 -1.442695, %v663_v52  ;;  %v620_v59 = vpop.f32.mrb[15].mxu0  ;;  %v661_v60 = vpop.f32.mrb[15].mxu1  ;;  %v1241_v36 = vmul.f32 -1.442695, %v665_v63 }
 0x405   :  { %v1240_v61 = vmul.f32 -1.442695, %v664_v55 }
 0x406   :  { %1372 = vpow2.f32 %v1239_v58 }
 0x407   :  { %1374 = vpow2.f32 %v1240_v61 }
 0x408   :  { %1376 = vtanh.f32 %v666_v33 }
 0x409   :  { %1378 = vpow2.f32 %v1241_v36  ;;  %v1246_v36 = vld [vmem:[%s2174_s0 + $0x98] sm:$0xff] }
 0x410   :  { %v1373_v37 = vpop.eup %1372 }
 0x411   :  { %v670_v38 = vadd.f32 1.0, %v1373_v37  ;;  %v1375_v39 = vpop.eup %1374 }
 0x412   :  { %v676_v41 = vadd.f32 1.0, %v1375_v39  ;;  %v1377_v42 = vpop.eup %1376 }
 0x413   :  { %1380 = vrcp.f32 %v670_v38  ;;  %v1379_v43 = vpop.eup %1378 }
 0x414   :  { %1382 = vrcp.f32 %v676_v41  ;;  %v682_v47 = vadd.f32 1.0, %v1379_v43 }
 0x416   :  { %1384 = vrcp.f32 %v682_v47 }
 0x41d   :  { %v1381_v44 = vpop.eup %1380 }
 0x41e   :  { %v687_v45 = vmul.f32 %v1381_v44, %v1377_v42  ;;  %v1383_v46 = vpop.eup %1382 }
 0x41f   :  { %v686_v48 = vmul.f32 %v1383_v46, %v1874_v35  ;;  %v1243_v35 = vld [vmem:[%s2174_s0 + $0x80] sm:$0xff] }
 0x420   :  { %v1385_v49 = vpop.eup %1384 }
 0x421   :  { %v1927_v40 = vadd.f32 %v687_v45, %v686_v48 }
 0x423   :  { %1386 = vtanh.f32 %v1927_v40 }
 0x42d   :  { %v1387_v50 = vpop.eup %1386 }
 0x42e   :  { %v690_v51 = vmul.f32 %v1387_v50, %v1385_v49 }
 0x430   :  { %1242 = vst [vmem:[%s2176_s4 + $0x18] sm:$0xff] %v690_v51  ;;  %v698_v52 = vpack.c.bf16 %v690_v51, %v690_v51 }
 0x432   :  { %732 = vmatmul.mubr.bf16.vlgmr.msra.gmra.mrb[16].mxu0 %v698_v52  ;;  %773 = vmatmul.mubr.bf16.vlgmr.msra.gmra.mrb[16].mxu1 %v698_v52 }
 0x433   :  { %818 = vmatpush1.bf16.msra.mxu0 %v1530_v2  ;;  %859 = vmatpush1.bf16.msra.mxu1 %v1558_v7 }
 0x434   :  { %819 = vmatprep.subr.bf16.mxu0 %v1536_v3  ;;  %860 = vmatprep.subr.bf16.mxu1 %v1577_v10 }
 0x435   :  { %849 = vmatprep.mubr.bf16.mxu0 %v1484_v1  ;;  %890 = vmatprep.mubr.bf16.mxu1 %v1484_v1 }
 0x437   :  { %820 = vmatpush1.bf16.msra.mxu0 %v1542_v4  ;;  %861 = vmatpush1.bf16.msra.mxu1 %v1582_v11 }
 0x438   :  { %821 = vmatprep.subr.bf16.mxu0 %v1548_v5  ;;  %862 = vmatprep.subr.bf16.mxu1 %v1599_v14 }
 0x43b   :  { %822 = vmatpush1.bf16.msra.mxu0 %v1564_v8  ;;  %863 = vmatpush1.bf16.msra.mxu1 %v1606_v15 }
 0x43c   :  { %823 = vmatprep.subr.bf16.mxu0 %v1571_v9  ;;  %864 = vmatprep.subr.bf16.mxu1 %v1612_v16 }
 0x43f   :  { %824 = vmatpush1.bf16.msra.mxu0 %v1589_v12  ;;  %865 = vmatpush1.bf16.msra.mxu1 %v1630_v19 }
 0x440   :  { %825 = vmatprep.subr.bf16.mxu0 %v1594_v13  ;;  %866 = vmatprep.subr.bf16.mxu1 %v1636_v20 }
 0x443   :  { %826 = vmatpush1.bf16.msra.mxu0 %v1618_v17  ;;  %867 = vmatpush1.bf16.msra.mxu1 %v1654_v23 }
 0x444   :  { %827 = vmatprep.subr.bf16.mxu0 %v1624_v18  ;;  %868 = vmatprep.subr.bf16.mxu1 %v1660_v24 }
 0x447   :  { %828 = vmatpush1.bf16.msra.mxu0 %v1641_v21  ;;  %869 = vmatpush1.bf16.msra.mxu1 %v1678_v27 }
 0x448   :  { %829 = vmatprep.subr.bf16.mxu0 %v1647_v22  ;;  %870 = vmatprep.subr.bf16.mxu1 %v1684_v28 }
 0x44b   :  { %830 = vmatpush1.bf16.msra.mxu0 %v1666_v25  ;;  %871 = vmatpush1.bf16.msra.mxu1 %v1700_v31 }
 0x44c   :  { %831 = vmatprep.subr.bf16.mxu0 %v1672_v26  ;;  %872 = vmatprep.subr.bf16.mxu1 %v1706_v32 }
 0x44f   :  { %832 = vmatpush1.bf16.msra.mxu0 %v1690_v29  ;;  %873 = vmatpush1.bf16.msra.mxu1 %v1713_v34 }
 0x450   :  { %935 = vmatprep.subr.bf16.mxu0 %v1523_v0  ;;  %976 = vmatprep.subr.bf16.mxu1 %v1553_v6 }
 0x505   :  { %v733_v54 = vpop.f32.mrb[16].mxu0  ;;  %v774_v55 = vpop.f32.mrb[16].mxu1 }
 0x506   :  { %v781_v56 = vadd.f32 %v1243_v35, %v733_v54  ;;  %v735_v57 = vpop.f32.mrb[17].mxu0  ;;  %v776_v58 = vpop.f32.mrb[17].mxu1  ;;  %v783_v33 = vadd.f32 %v1245_v30, %v774_v55  ;;  %v1459_v30 = vld [vmem:[%s2172_s1 + $0x28] ss:$16 sps:$4 sm:$0xff]  }
 0x507   :  { %v782_v59 = vadd.f32 %v1244_v53, %v735_v57  ;;  %v737_v60 = vpop.f32.mrb[18].mxu0  ;;  %v778_v61 = vpop.f32.mrb[18].mxu1  ;;  %v784_v37 = vadd.f32 %v1246_v36, %v776_v58  ;;  %v1461_v36 = vld [vmem:[%s2172_s1 + $0x4c] ss:$16 sps:$4 sm:$0xff]  }
 0x508   :  { %v1247_v62 = vmul.f32 -1.442695, %v781_v56  ;;  %v738_v0 = vpop.f32.mrb[19].mxu0  ;;  %v779_v63 = vpop.f32.mrb[19].mxu1  ;;  %v1249_v38 = vmul.f32 -1.442695, %v783_v33 }
 0x509   :  { %v1248_v6 = vmul.f32 -1.442695, %v782_v59  ;;  %v1454_v61 = vld [vmem:[%s2172_s1] ss:$16 sps:$4 sm:$0xff]   ;;  %v1456_v0 = vld [vmem:[%s2172_s1 + $0x24] ss:$16 sps:$4 sm:$0xff]  }
 0x50a   :  { %1388 = vpow2.f32 %v1247_v62  ;;  %v1455_v62 = vld [vmem:[%s2172_s1 + $0x8] ss:$16 sps:$4 sm:$0xff]   ;;  %v1457_v63 = vld [vmem:[%s2172_s1 + $0x2c] ss:$16 sps:$4 sm:$0xff]   ;;  %v1460_v33 = vld [vmem:[%s2172_s1 + $0x44] ss:$16 sps:$4 sm:$0xff]  }
 0x50b   :  { %1390 = vpow2.f32 %v1248_v6  ;;  %v1458_v6 = vld [vmem:[%s2172_s1 + $0x20] ss:$16 sps:$4 sm:$0xff]  }
 0x50c   :  { %1392 = vtanh.f32 %v784_v37  ;;  %v1463_v37 = vld [vmem:[%s2172_s1 + $0x48] ss:$16 sps:$4 sm:$0xff]  }
 0x50d   :  { %1394 = vpow2.f32 %v1249_v38  ;;  %v1464_v38 = vld [vmem:[%s2172_s1 + $0x64] ss:$16 sps:$4 sm:$0xff]  }
 0x514   :  { %v1389_v39 = vpop.eup %1388 }
 0x515   :  { %v788_v41 = vadd.f32 1.0, %v1389_v39  ;;  %v1391_v42 = vpop.eup %1390  ;;  %v1465_v39 = vld [vmem:[%s2172_s1 + $0x6c] ss:$16 sps:$4 sm:$0xff]  }
 0x516   :  { %v794_v43 = vadd.f32 1.0, %v1391_v42  ;;  %v1393_v44 = vpop.eup %1392  ;;  %v1467_v42 = vld [vmem:[%s2172_s1 + $0x68] ss:$16 sps:$4 sm:$0xff]  }
 0x517   :  { %1396 = vrcp.f32 %v788_v41  ;;  %v1395_v45 = vpop.eup %1394  ;;  %v1466_v41 = vld [vmem:[%s2172_s1 + $0x60] ss:$16 sps:$4 sm:$0xff]  }
 0x518   :  { %1398 = vrcp.f32 %v794_v43  ;;  %v800_v49 = vadd.f32 1.0, %v1395_v45  ;;  %v1468_v43 = vld [vmem:[%s2172_s1 + $0x84] ss:$16 sps:$4 sm:$0xff]   ;;  %v1470_v45 = vld [vmem:[%s2172_s1 + $0x80] ss:$16 sps:$4 sm:$0xff]  }
 0x51a   :  { %1400 = vrcp.f32 %v800_v49  ;;  %v1474_v49 = vld [vmem:[%s2172_s1 + $0xa0] ss:$16 sps:$4 sm:$0xff]  }
 0x521   :  { %v1397_v46 = vpop.eup %1396 }
 0x522   :  { %v805_v47 = vmul.f32 %v1397_v46, %v1393_v44  ;;  %v1399_v48 = vpop.eup %1398  ;;  %v1469_v44 = vld [vmem:[%s2172_s1 + $0x8c] ss:$16 sps:$4 sm:$0xff]   ;;  %v1471_v46 = vld [vmem:[%s2172_s1 + $0x88] ss:$16 sps:$4 sm:$0xff]  }
 0x523   :  { %v804_v50 = vmul.f32 %v1399_v48, %v1927_v40  ;;  %v1473_v48 = vld [vmem:[%s2172_s1 + $0xac] ss:$16 sps:$4 sm:$0xff]  }
 0x524   :  { %v1401_v52 = vpop.eup %1400 }
 0x525   :  { %v1980_v51 = vadd.f32 %v805_v47, %v804_v50  ;;  %v1472_v47 = vld [vmem:[%s2172_s1 + $0xa4] ss:$16 sps:$4 sm:$0xff]   ;;  %v1475_v50 = vld [vmem:[%s2172_s1 + $0xa8] ss:$16 sps:$4 sm:$0xff]  }
 0x527   :  { %1402 = vtanh.f32 %v1980_v51 }
 0x531   :  { %v1403_v35 = vpop.eup %1402 }
 0x532   :  { %v808_v53 = vmul.f32 %v1403_v35, %v1401_v52  ;;  %v1477_v52 = vld [vmem:[%s2172_s1 + $0xcc] ss:$16 sps:$4 sm:$0xff]   ;;  %v1478_v35 = vld [vmem:[%s2172_s1 + $0xc0] ss:$16 sps:$4 sm:$0xff]  }
 0x534   :  { %1250 = vst [vmem:[%s2176_s4 + $0x20] sm:$0xff] %v808_v53  ;;  %v816_v54 = vpack.c.bf16 %v808_v53, %v808_v53  ;;  %v1479_v53 = vld [vmem:[%s2172_s1 + $0xc8] ss:$16 sps:$4 sm:$0xff]  }
 0x536   :  { %850 = vmatmul.mubr.bf16.vlgmr.msra.gmra.mrb[20].mxu0 %v816_v54  ;;  %891 = vmatmul.mubr.bf16.vlgmr.msra.gmra.mrb[20].mxu1 %v816_v54  ;;  %v1480_v54 = vld [vmem:[%s2172_s1 + $0xe4] ss:$16 sps:$4 sm:$0xff]  }
 0x537   :  { %936 = vmatpush1.bf16.msra.mxu0 %v1530_v2  ;;  %977 = vmatpush1.bf16.msra.mxu1 %v1558_v7  ;;  %v1452_v2 = vld [vmem:[%s2172_s1 + $0x4] ss:$16 sps:$4 sm:$0xff]  }
 0x538   :  { %937 = vmatprep.subr.bf16.mxu0 %v1536_v3  ;;  %978 = vmatprep.subr.bf16.mxu1 %v1577_v10  ;;  %v1453_v3 = vld [vmem:[%s2172_s1 + $0xc] ss:$16 sps:$4 sm:$0xff]  }
 0x539   :  { %967 = vmatprep.mubr.bf16.mxu0 %v1484_v1  ;;  %1008 = vmatprep.mubr.bf16.mxu1 %v1484_v1 }
 0x53b   :  { %938 = vmatpush1.bf16.msra.mxu0 %v1542_v4  ;;  %979 = vmatpush1.bf16.msra.mxu1 %v1582_v11  ;;  %v1251_v4 = vld [vmem:[%s2174_s0 + $0xa0] sm:$0xff] }
 0x53c   :  { %939 = vmatprep.subr.bf16.mxu0 %v1548_v5  ;;  %980 = vmatprep.subr.bf16.mxu1 %v1599_v14  ;;  %v1252_v5 = vld [vmem:[%s2174_s0 + $0xa8] sm:$0xff] }
 0x53f   :  { %940 = vmatpush1.bf16.msra.mxu0 %v1564_v8  ;;  %981 = vmatpush1.bf16.msra.mxu1 %v1606_v15 }
 0x540   :  { %941 = vmatprep.subr.bf16.mxu0 %v1571_v9  ;;  %982 = vmatprep.subr.bf16.mxu1 %v1612_v16 }
 0x543   :  { %942 = vmatpush1.bf16.msra.mxu0 %v1589_v12  ;;  %983 = vmatpush1.bf16.msra.mxu1 %v1630_v19  ;;  %v1253_v19 = vld [vmem:[%s2174_s0 + $0xb0] sm:$0xff] }
 0x544   :  { %943 = vmatprep.subr.bf16.mxu0 %v1594_v13  ;;  %984 = vmatprep.subr.bf16.mxu1 %v1636_v20 }
 0x547   :  { %944 = vmatpush1.bf16.msra.mxu0 %v1618_v17  ;;  %985 = vmatpush1.bf16.msra.mxu1 %v1654_v23 }
 0x548   :  { %945 = vmatprep.subr.bf16.mxu0 %v1624_v18  ;;  %986 = vmatprep.subr.bf16.mxu1 %v1660_v24 }
 0x54b   :  { %946 = vmatpush1.bf16.msra.mxu0 %v1641_v21  ;;  %987 = vmatpush1.bf16.msra.mxu1 %v1678_v27  ;;  %v1254_v21 = vld [vmem:[%s2174_s0 + $0xb8] sm:$0xff] }
 0x54c   :  { %947 = vmatprep.subr.bf16.mxu0 %v1647_v22  ;;  %988 = vmatprep.subr.bf16.mxu1 %v1684_v28 }
 0x54f   :  { %948 = vmatpush1.bf16.msra.mxu0 %v1666_v25  ;;  %989 = vmatpush1.bf16.msra.mxu1 %v1700_v31 }
 0x550   :  { %949 = vmatprep.subr.bf16.mxu0 %v1672_v26  ;;  %990 = vmatprep.subr.bf16.mxu1 %v1706_v32 }
 0x553   :  { %950 = vmatpush1.bf16.msra.mxu0 %v1690_v29  ;;  %991 = vmatpush1.bf16.msra.mxu1 %v1713_v34 }
 0x554   :  { %1053 = vmatprep.subr.bf16.mxu0 %v1452_v2  ;;  %1094 = vmatprep.subr.bf16.mxu1 %v1453_v3  ;;  %v1481_v2 = vld [vmem:[%s2172_s1 + $0xec] ss:$16 sps:$4 sm:$0xff]   ;;  %v1482_v3 = vld [vmem:[%s2172_s1 + $0xe0] ss:$16 sps:$4 sm:$0xff]  }
 0x609   :  { %v851_v7 = vpop.f32.mrb[20].mxu0  ;;  %v892_v8 = vpop.f32.mrb[20].mxu1 }
 0x60a   :  { %v899_v9 = vadd.f32 %v1251_v4, %v851_v7  ;;  %v853_v10 = vpop.f32.mrb[21].mxu0  ;;  %v894_v11 = vpop.f32.mrb[21].mxu1  ;;  %v901_v20 = vadd.f32 %v1253_v19, %v892_v8  ;;  %v1483_v4 = vld [vmem:[%s2172_s1 + $0xe8] ss:$16 sps:$4 sm:$0xff]  }
 0x60b   :  { %v900_v12 = vadd.f32 %v1252_v5, %v853_v10  ;;  %v855_v13 = vpop.f32.mrb[22].mxu0  ;;  %v896_v14 = vpop.f32.mrb[22].mxu1  ;;  %v902_v22 = vadd.f32 %v1254_v21, %v894_v11  ;;  %v1259_v5 = vld [vmem:[%s2174_s0 + $0xc0] sm:$0xff]  ;;  %v1260_v7 = vld [vmem:[%s2174_s0 + $0xc8] sm:$0xff] }
 0x60c   :  { %v1255_v15 = vmul.f32 -1.442695, %v899_v9  ;;  %v856_v16 = vpop.f32.mrb[23].mxu0  ;;  %v897_v17 = vpop.f32.mrb[23].mxu1  ;;  %v1257_v23 = vmul.f32 -1.442695, %v901_v20 }
 0x60d   :  { %v1256_v18 = vmul.f32 -1.442695, %v900_v12  ;;  %v1261_v20 = vld [vmem:[%s2174_s0 + $0xd0] sm:$0xff] }
 0x60e   :  { %1404 = vpow2.f32 %v1255_v15 }
 0x60f   :  { %1406 = vpow2.f32 %v1256_v18 }
 0x610   :  { %1408 = vtanh.f32 %v902_v22  ;;  %v1262_v22 = vld [vmem:[%s2174_s0 + $0xd8] sm:$0xff] }
 0x611   :  { %1410 = vpow2.f32 %v1257_v23 }
 0x618   :  { %v1405_v24 = vpop.eup %1404 }
 0x619   :  { %v906_v25 = vadd.f32 1.0, %v1405_v24  ;;  %v1407_v26 = vpop.eup %1406 }
 0x61a   :  { %v912_v27 = vadd.f32 1.0, %v1407_v26  ;;  %v1409_v28 = vpop.eup %1408 }
 0x61b   :  { %1412 = vrcp.f32 %v906_v25  ;;  %v1411_v29 = vpop.eup %1410 }
 0x61c   :  { %1414 = vrcp.f32 %v912_v27  ;;  %v918_v40 = vadd.f32 1.0, %v1411_v29 }
 0x61e   :  { %1416 = vrcp.f32 %v918_v40 }
 0x625   :  { %v1413_v31 = vpop.eup %1412 }
 0x626   :  { %v923_v32 = vmul.f32 %v1413_v31, %v1409_v28  ;;  %v1415_v34 = vpop.eup %1414 }
 0x627   :  { %v922_v55 = vmul.f32 %v1415_v34, %v1980_v51  ;;  %v1476_v51 = vld [vmem:[%s2172_s1 + $0xc4] ss:$16 sps:$4 sm:$0xff]  }
 0x628   :  { %v1417_v57 = vpop.eup %1416 }
 0x629   :  { %v2037_v56 = vadd.f32 %v923_v32, %v922_v55 }
 0x62b   :  { %1418 = vtanh.f32 %v2037_v56 }
 0x635   :  { %v1419_v58 = vpop.eup %1418 }
 0x636   :  { %v926_v59 = vmul.f32 %v1419_v58, %v1417_v57 }
 0x638   :  { %1258 = vst [vmem:[%s2176_s4 + $0x28] sm:$0xff] %v926_v59  ;;  %v934_v60 = vpack.c.bf16 %v926_v59, %v926_v59 }
 0x63a   :  { %968 = vmatmul.mubr.bf16.vlgmr.msra.gmra.mrb[24].mxu0 %v934_v60  ;;  %1009 = vmatmul.mubr.bf16.vlgmr.msra.gmra.mrb[24].mxu1 %v934_v60 }
 0x63b   :  { %1054 = vmatpush1.bf16.msra.mxu0 %v1454_v61  ;;  %1095 = vmatpush1.bf16.msra.mxu1 %v1455_v62 }
 0x63c   :  { %1055 = vmatprep.subr.bf16.mxu0 %v1456_v0  ;;  %1096 = vmatprep.subr.bf16.mxu1 %v1457_v63  ;;  %v1267_v0 = vld [vmem:[%s2174_s0 + $0xe0] sm:$0xff] }
 0x63d   :  { %1085 = vmatprep.mubr.bf16.mxu0 %v1484_v1  ;;  %1126 = vmatprep.mubr.bf16.mxu1 %v1484_v1  ;;  %v1462_v1 = vld [vmem:[%s2172_s1 + $0x40] ss:$16 sps:$4 sm:$0xff]  }
 0x63f   :  { %1056 = vmatpush1.bf16.msra.mxu0 %v1458_v6  ;;  %1097 = vmatpush1.bf16.msra.mxu1 %v1459_v30 }
 0x640   :  { %1057 = vmatprep.subr.bf16.mxu0 %v1460_v33  ;;  %1098 = vmatprep.subr.bf16.mxu1 %v1461_v36 }
 0x643   :  { %1058 = vmatpush1.bf16.msra.mxu0 %v1462_v1  ;;  %1099 = vmatpush1.bf16.msra.mxu1 %v1463_v37 }
 0x644   :  { %1059 = vmatprep.subr.bf16.mxu0 %v1464_v38  ;;  %1100 = vmatprep.subr.bf16.mxu1 %v1465_v39 }
 0x647   :  { %1060 = vmatpush1.bf16.msra.mxu0 %v1466_v41  ;;  %1101 = vmatpush1.bf16.msra.mxu1 %v1467_v42 }
 0x648   :  { %1061 = vmatprep.subr.bf16.mxu0 %v1468_v43  ;;  %1102 = vmatprep.subr.bf16.mxu1 %v1469_v44  ;;  %v1269_v44 = vld [vmem:[%s2174_s0 + $0xf0] sm:$0xff] }
 0x64b   :  { %1062 = vmatpush1.bf16.msra.mxu0 %v1470_v45  ;;  %1103 = vmatpush1.bf16.msra.mxu1 %v1471_v46  ;;  %v1270_v46 = vld [vmem:[%s2174_s0 + $0xf8] sm:$0xff] }
 0x64c   :  { %1063 = vmatprep.subr.bf16.mxu0 %v1472_v47  ;;  %1104 = vmatprep.subr.bf16.mxu1 %v1473_v48 }
 0x64f   :  { %1064 = vmatpush1.bf16.msra.mxu0 %v1474_v49  ;;  %1105 = vmatpush1.bf16.msra.mxu1 %v1475_v50 }
 0x650   :  { %1065 = vmatprep.subr.bf16.mxu0 %v1476_v51  ;;  %1106 = vmatprep.subr.bf16.mxu1 %v1477_v52 }
 0x653   :  { %1066 = vmatpush1.bf16.msra.mxu0 %v1478_v35  ;;  %1107 = vmatpush1.bf16.msra.mxu1 %v1479_v53 }
 0x654   :  { %1067 = vmatprep.subr.bf16.mxu0 %v1480_v54  ;;  %1108 = vmatprep.subr.bf16.mxu1 %v1481_v2 }
 0x657   :  { %1068 = vmatpush1.bf16.msra.mxu0 %v1482_v3  ;;  %1109 = vmatpush1.bf16.msra.mxu1 %v1483_v4 }
 0x70d   :  { %v969_v8 = vpop.f32.mrb[24].mxu0  ;;  %v1010_v9 = vpop.f32.mrb[24].mxu1 }
 0x70e   :  { %v1017_v10 = vadd.f32 %v1259_v5, %v969_v8  ;;  %v971_v11 = vpop.f32.mrb[25].mxu0  ;;  %v1012_v12 = vpop.f32.mrb[25].mxu1  ;;  %v1019_v21 = vadd.f32 %v1261_v20, %v1010_v9 }
 0x70f   :  { %v1018_v13 = vadd.f32 %v1260_v7, %v971_v11  ;;  %v973_v14 = vpop.f32.mrb[26].mxu0  ;;  %v1014_v15 = vpop.f32.mrb[26].mxu1  ;;  %v1020_v23 = vadd.f32 %v1262_v22, %v1012_v12 }
 0x710   :  { %v1263_v16 = vmul.f32 -1.442695, %v1017_v10  ;;  %v974_v17 = vpop.f32.mrb[27].mxu0  ;;  %v1015_v18 = vpop.f32.mrb[27].mxu1  ;;  %v1265_v24 = vmul.f32 -1.442695, %v1019_v21 }
 0x711   :  { %v1264_v19 = vmul.f32 -1.442695, %v1018_v13 }
 0x712   :  { %1420 = vpow2.f32 %v1263_v16 }
 0x713   :  { %1422 = vpow2.f32 %v1264_v19 }
 0x714   :  { %1424 = vtanh.f32 %v1020_v23 }
 0x715   :  { %1426 = vpow2.f32 %v1265_v24 }
 0x71c   :  { %v1421_v25 = vpop.eup %1420 }
 0x71d   :  { %v1024_v26 = vadd.f32 1.0, %v1421_v25  ;;  %v1423_v27 = vpop.eup %1422 }
 0x71e   :  { %v1030_v28 = vadd.f32 1.0, %v1423_v27  ;;  %v1425_v29 = vpop.eup %1424 }
 0x71f   :  { %1428 = vrcp.f32 %v1024_v26  ;;  %v1427_v31 = vpop.eup %1426 }
 0x720   :  { %1430 = vrcp.f32 %v1030_v28  ;;  %v1036_v55 = vadd.f32 1.0, %v1427_v31 }
 0x722   :  { %1432 = vrcp.f32 %v1036_v55 }
 0x729   :  { %v1429_v32 = vpop.eup %1428 }
 0x72a   :  { %v1041_v34 = vmul.f32 %v1429_v32, %v1425_v29  ;;  %v1431_v40 = vpop.eup %1430 }
 0x72b   :  { %v1040_v57 = vmul.f32 %v1431_v40, %v2037_v56  ;;  %v1268_v56 = vld [vmem:[%s2174_s0 + $0xe8] sm:$0xff] }
 0x72c   :  { %v1433_v59 = vpop.eup %1432 }
 0x72d   :  { %v1042_v58 = vadd.f32 %v1041_v34, %v1040_v57 }
 0x72f   :  { %1434 = vtanh.f32 %v1042_v58 }
 0x739   :  { %v1435_v60 = vpop.eup %1434 }
 0x73a   :  { %v1044_v61 = vmul.f32 %v1435_v60, %v1433_v59 }
 0x73c   :  { %1266 = vst [vmem:[%s2176_s4 + $0x30] sm:$0xff] %v1044_v61  ;;  %v1052_v62 = vpack.c.bf16 %v1044_v61, %v1044_v61 }
 0x73e   :  { %1086 = vmatmul.mubr.bf16.vlgmr.msra.gmra.mrb[28].mxu0 %v1052_v62  ;;  %1127 = vmatmul.mubr.bf16.vlgmr.msra.gmra.mrb[28].mxu1 %v1052_v62 }
 0x811   :  { %v1087_v63 = vpop.f32.mrb[28].mxu0  ;;  %v1128_v6 = vpop.f32.mrb[28].mxu1 }
 0x812   :  { %v1135_v30 = vadd.f32 %v1267_v0, %v1087_v63  ;;  %v1089_v33 = vpop.f32.mrb[29].mxu0  ;;  %v1130_v36 = vpop.f32.mrb[29].mxu1  ;;  %v1137_v45 = vadd.f32 %v1269_v44, %v1128_v6 }
 0x813   :  { %v1136_v1 = vadd.f32 %v1268_v56, %v1089_v33  ;;  %v1091_v37 = vpop.f32.mrb[30].mxu0  ;;  %v1132_v38 = vpop.f32.mrb[30].mxu1  ;;  %v1138_v47 = vadd.f32 %v1270_v46, %v1130_v36 }
 0x814   :  { %v1271_v39 = vmul.f32 -1.442695, %v1135_v30  ;;  %v1092_v41 = vpop.f32.mrb[31].mxu0  ;;  %v1133_v42 = vpop.f32.mrb[31].mxu1  ;;  %v1273_v48 = vmul.f32 -1.442695, %v1137_v45 }
 0x815   :  { %v1272_v43 = vmul.f32 -1.442695, %v1136_v1 }
 0x816   :  { %1436 = vpow2.f32 %v1271_v39 }
 0x817   :  { %1438 = vpow2.f32 %v1272_v43 }
 0x818   :  { %1440 = vtanh.f32 %v1138_v47 }
 0x819   :  { %1442 = vpow2.f32 %v1273_v48 }
 0x820   :  { %v1437_v49 = vpop.eup %1436 }
 0x821   :  { %v1142_v50 = vadd.f32 1.0, %v1437_v49  ;;  %v1439_v51 = vpop.eup %1438 }
 0x822   :  { %v1148_v52 = vadd.f32 1.0, %v1439_v51  ;;  %v1441_v35 = vpop.eup %1440 }
 0x823   :  { %1444 = vrcp.f32 %v1142_v50  ;;  %v1443_v53 = vpop.eup %1442 }
 0x824   :  { %1446 = vrcp.f32 %v1148_v52  ;;  %v1154_v4 = vadd.f32 1.0, %v1443_v53 }
 0x826   :  { %1448 = vrcp.f32 %v1154_v4 }
 0x82d   :  { %v1445_v54 = vpop.eup %1444 }
 0x82e   :  { %v1159_v2 = vmul.f32 %v1445_v54, %v1441_v35  ;;  %v1447_v3 = vpop.eup %1446 }
 0x82f   :  { %v1158_v5 = vmul.f32 %v1447_v3, %v1042_v58 }
 0x830   :  { %v1449_v8 = vpop.eup %1448 }
 0x831   :  { %v1160_v7 = vadd.f32 %v1159_v2, %v1158_v5 }
 0x833   :  { %1450 = vtanh.f32 %v1160_v7  ;;  %1171 = vst [vmem:[%s2177_s6] sm:$0xff] %v1160_v7 }
 0x83d   :  { %v1451_v9 = vpop.eup %1450 }
 0x83e   :  { %v1162_v10 = vmul.f32 %v1451_v9, %v1449_v8 }
 0x840   :  { %1274 = vst [vmem:[%s2176_s4 + $0x38] sm:$0xff] %v1162_v10  ;;  %1170 = vst [vmem:[%s2178_s5] sm:$0xff] %v1162_v10 }

</bundles_post_ra>
